<compile_context>
chip_gen: v5e
topology: v5e:2x2
jax: 0.10.0
libtpu: 0.0.40
codegen_flags: <defaults>
</compile_context>

<pallas_src>
import functools

import numpy as np
import jax
import jax.numpy as jnp
from jax.experimental import pallas as pl
from jax.experimental.pallas import tpu as pltpu

LANE = 128


def _round_up(x, m):
    return ((x + m - 1) // m) * m


def _act(y, kind):
    if kind == "sigmoid":
        return jax.nn.sigmoid(y)
    return jnp.maximum(y, 0.0)


# ----------------------------- fused DLRM kernel ----------------------------

def _dlrm_fused_kernel(*refs, ntab, nbot, ntop, P, pairs, k0, k0p, np_pad,
                       bot_acts, top_acts):
    # ref order: dense, idx, tab_0..tab_{ntab-1}, (Wb_i, bb_i)*nbot,
    #            W1x, W1z, b1, (Wt_k, bt_k)*(ntop-1), out
    it = iter(refs)
    dense_ref = next(it)
    idx_ref = next(it)
    tab_refs = [next(it) for _ in range(ntab)]
    bot_wb = [(next(it), next(it)) for _ in range(nbot)]
    w1x_ref, w1z_ref, b1_ref = next(it), next(it), next(it)
    top_wb = [(next(it), next(it)) for _ in range(ntop - 1)]
    out_ref = next(it)

    # ---- bottom MLP: bf16 matmul operands, f32 accumulate / bias / act ----
    xd = dense_ref[...]                                   # (TB, k0) f32
    tb = xd.shape[0]
    if k0p > k0:                                          # in-kernel zero pad
        xd = jnp.concatenate(
            [xd, jnp.zeros((tb, k0p - k0), xd.dtype)], axis=1)
    h_bf = xd.astype(jnp.bfloat16)
    h_f32 = xd
    for (w_ref, b_ref), act in zip(bot_wb, bot_acts):
        y = jnp.dot(h_bf, w_ref[...], preferred_element_type=jnp.float32)
        h_f32 = _act(y + b_ref[...], act)
        h_bf = h_f32.astype(jnp.bfloat16)
    # Padded-lane invariant: bottom output padded lanes are zero (ReLU, zero
    # weight cols / bias), and every interaction pair contains at least one
    # zero-padded embedding feature, so padded lanes never leak into zflat.

    # ---- EmbeddingBag(mode='sum') as one-hot-count matmul on the MXU ----
    idx = idx_ref[...]                                    # (TB, ntab*P) int32
    feats = [h_f32]                                       # f32 (TB, dp) each
    iotas = {}                                            # hoist / reuse iota
    for t in range(ntab):
        tab = tab_refs[t][...]                            # (Vp, dp) bf16
        vp = tab.shape[0]
        if vp not in iotas:
            iotas[vp] = jax.lax.broadcasted_iota(jnp.int32, (tb, vp), 1)
        iota = iotas[vp]
        counts = jnp.zeros((tb, vp), jnp.int32)
        for p in range(P):
            c = t * P + p
            counts = counts + (iota == idx[:, c:c + 1]).astype(jnp.int32)
        counts_bf = counts.astype(jnp.float32).astype(jnp.bfloat16)  # exact
        feats.append(jnp.dot(counts_bf, tab,
                             preferred_element_type=jnp.float32))

    # ---- 'dot' interaction: reduce-then-matmul (PyTorch lij pair order) ----
    # One (TB, dp) pair product live at a time; reduce over emb dim -> column.
    cols = [jnp.sum(feats[i] * feats[j], axis=1, keepdims=True)
            for (i, j) in pairs]                          # each (TB, 1) f32
    npairs = len(pairs)
    if np_pad > npairs:
        cols.append(jnp.zeros((tb, np_pad - npairs), jnp.float32))
    zflat_bf = jnp.concatenate(cols, axis=1).astype(jnp.bfloat16)  # (TB, NPp)

    # First top layer: dense-x part + interaction part folded together.
    z = (jnp.dot(h_bf, w1x_ref[...], preferred_element_type=jnp.float32)
         + jnp.dot(zflat_bf, w1z_ref[...], preferred_element_type=jnp.float32)
         + b1_ref[...])
    z = _act(z, top_acts[0])

    # ---- remaining top MLP layers ----
    for (w_ref, b_ref), act in zip(top_wb, top_acts[1:]):
        y = jnp.dot(z.astype(jnp.bfloat16), w_ref[...],
                    preferred_element_type=jnp.float32)
        z = _act(y + b_ref[...], act)

    out_ref[...] = z[:, :1].astype(out_ref.dtype)         # only the real logit


# ------------------------------ DLRM forward -------------------------------

def dlrm_forward(dense_x, lS_i, bot_params, top_params, emb_tables, *, tb=256):
    """Fused sequential_forward.  Fixed-size bags of P indices per feature."""
    B = dense_x.shape[0]
    ntab = len(emb_tables)
    P = lS_i[0].shape[1]
    nf = 1 + ntab
    pairs = tuple((i, j) for i in range(nf) for j in range(i))
    assert all(i != j for (i, j) in pairs)   # padded-lane invariant (no self-pairs)
    npairs = len(pairs)
    np_pad = _round_up(npairs, LANE)
    m_spa = emb_tables[0].shape[1]
    dp = _round_up(m_spa, LANE)

    # Batch tile: 256-512 is good on v5e/v6e (128 MiB VMEM); keep <=256 on v7x
    # (64 MiB / TC) and ensure Bp//TB >= 2 so both v7x TensorCores get work.
    TB = min(tb, _round_up(B, 8))
    Bp = _round_up(B, TB)

    def pad2(a, rows, cols, dtype):
        out = jnp.zeros((rows, cols), dtype)
        return out.at[:a.shape[0], :a.shape[1]].set(a.astype(dtype))

    # Streamed inputs at natural lane width (padded to 128 inside the kernel).
    k0 = bot_params[0][0].shape[0]
    k0p = _round_up(k0, LANE)
    xin = pad2(dense_x, Bp, k0, jnp.float32)

    idx = jnp.stack(lS_i, axis=1).reshape(B, ntab * P).astype(jnp.int32)
    idx = pad2(idx, Bp, ntab * P, jnp.int32)

    # Resident operands: bf16 matmul operands, f32 biases, zero-padded to 128.
    tabs = [pad2(t, _round_up(t.shape[0], LANE), dp, jnp.bfloat16)
            for t in emb_tables]

    bot_in, bot_acts = [], []
    for w_t, b, act in bot_params:
        n, m = w_t.shape
        bot_in += [pad2(w_t, _round_up(n, LANE), _round_up(m, LANE), jnp.bfloat16),
                   pad2(b, 1, _round_up(m, LANE), jnp.float32)]
        bot_acts.append(act)

    # Top MLP: split the first layer into the x part and the interaction part.
    w1_t, b1, act1 = top_params[0]
    k1, n1 = w1_t.shape
    assert k1 == m_spa + npairs
    n1p = _round_up(n1, LANE)
    w1x = pad2(w1_t[:m_spa, :], dp, n1p, jnp.bfloat16)        # (dp, n1p)
    w1z = pad2(w1_t[m_spa:, :], np_pad, n1p, jnp.bfloat16)    # (NPp, n1p), not repeated
    b1p = pad2(b1, 1, n1p, jnp.float32)
    top_acts, top_in = [act1], []
    for w_t, b, act in top_params[1:]:
        n, m = w_t.shape
        top_in += [pad2(w_t, _round_up(n, LANE), _round_up(m, LANE), jnp.bfloat16),
                   pad2(b, 1, _round_up(m, LANE), jnp.float32)]
        top_acts.append(act)

    residents = tabs + bot_in + [w1x, w1z, b1p] + top_in

    # VMEM budget: residents (x2 in case single-buffering is unavailable) +
    # double-buffered streamed tiles + rough per-tile intermediates, clamped to
    # [16, 56] MiB so the same code fits v7x's 64 MiB per-TC physical VMEM.
    res_bytes = sum(int(np.prod(a.shape)) * a.dtype.itemsize for a in residents)
    stream_bytes = TB * (k0 + ntab * P + 1) * 4
    max_vp = max(t.shape[0] for t in tabs)
    interm_bytes = TB * (k0p + 2 * dp * nf + 2 * max_vp + np_pad + 2 * n1p) * 4
    vmem_budget = 2 * res_bytes + 2 * stream_bytes + interm_bytes + (4 << 20)
    vmem_budget = int(min(max(vmem_budget, 16 << 20), 56 << 20))

    kernel = functools.partial(
        _dlrm_fused_kernel,
        ntab=ntab, nbot=len(bot_params), ntop=len(top_params),
        P=P, pairs=pairs, k0=k0, k0p=k0p, np_pad=np_pad,
        bot_acts=tuple(bot_acts), top_acts=tuple(top_acts))

    def run(single_buffer_residents):
        def res_spec(shape):
            imap = lambda i: (0,) * len(shape)
            if single_buffer_residents:
                return pl.BlockSpec(shape, imap,
                                    pipeline_mode=pl.Buffered(buffer_count=1))
            return pl.BlockSpec(shape, imap)

        in_specs = [pl.BlockSpec((TB, k0), lambda i: (i, 0)),
                    pl.BlockSpec((TB, ntab * P), lambda i: (i, 0))]
        in_specs += [res_spec(a.shape) for a in residents]

        return pl.pallas_call(
            kernel,
            grid=(Bp // TB,),
            in_specs=in_specs,
            out_specs=pl.BlockSpec((TB, 1), lambda i: (i, 0)),
            out_shape=jax.ShapeDtypeStruct((Bp, 1), jnp.float32),
            compiler_params=pltpu.CompilerParams(
                dimension_semantics=("parallel",),
                vmem_limit_bytes=vmem_budget),
        )(xin, idx, *residents)

    try:
        out = run(True)       # block-invariant residents single-buffered
    except Exception:
        out = run(False)      # this JAX rejects Buffered(1): default buffering

    return out[:B, :]         # loss_threshold == 0.0 -> no clamp


# --------------------------- parameter creation -----------------------------

def make_mlp_params(key, ln, sigmoid_layer):
    params = []
    for i in range(len(ln) - 1):
        n, m = int(ln[i]), int(ln[i + 1])
        key, k_w, k_b = jax.random.split(key, 3)
        W = jax.random.normal(k_w, (m, n), jnp.float32) * np.sqrt(2.0 / (m + n))
        b = jax.random.normal(k_b, (m,), jnp.float32) * np.sqrt(1.0 / m)
        act = "sigmoid" if i == sigmoid_layer else "relu"
        params.append((W.T, b.reshape(1, m), act))
    return key, params


# ------------------------------- reference ---------------------------------

def dlrm_reference(dense_x, lS_i, bot_params, top_params, emb_tables):
    x = dense_x
    for w_t, b, act in bot_params:
        x = x @ w_t + b
        x = jax.nn.sigmoid(x) if act == "sigmoid" else jnp.maximum(x, 0.0)
    ly = [tbl[idx].sum(axis=1) for idx, tbl in zip(lS_i, emb_tables)]
    T = jnp.stack([x] + ly, axis=1)
    Z = jnp.einsum("bnd,bmd->bnm", T, T)
    nf = T.shape[1]
    pairs = [(i, j) for i in range(nf) for j in range(i)]
    zflat = jnp.stack([Z[:, i, j] for i, j in pairs], axis=1)
    z = jnp.concatenate([x, zflat], axis=1)
    for w_t, b, act in top_params:
        z = z @ w_t + b
        z = jax.nn.sigmoid(z) if act == "sigmoid" else jnp.maximum(z, 0.0)
    return z


# ---------------------------------- main ------------------------------------

if __name__ == "__main__":
    B = 8                       # batch
    m_spa = 32                  # embedding dim
    ln_bot = [13, 64, m_spa]    # bottom MLP
    ln_emb = [48, 64, 80]       # vocab sizes of sparse features
    P = 4                       # fixed pooling (bag) size per sparse feature
    nf = 1 + len(ln_emb)        # dense + sparse features entering interaction
    ln_top = [m_spa + nf * (nf - 1) // 2, 64, 1]  # top MLP
    sigmoid_bot = -1                               # all ReLU
    sigmoid_top = len(ln_top) - 2                  # sigmoid on last layer

    key = jax.random.PRNGKey(0)
    key, bot_params = make_mlp_params(key, ln_bot, sigmoid_bot)
    key, top_params = make_mlp_params(key, ln_top, sigmoid_top)

    emb_tables = []
    for n in ln_emb:
        key, k = jax.random.split(key)
        bound = float(np.sqrt(1.0 / n))
        emb_tables.append(
            jax.random.uniform(k, (n, m_spa), jnp.float32, -bound, bound))

    key, kd = jax.random.split(key)
    dense_x = jax.random.normal(kd, (B, ln_bot[0]), jnp.float32)

    # lS_o kept only for interface parity with the PyTorch module: this kernel
    # supports fixed-size bags of exactly P indices per sparse feature.
    lS_o = [jnp.arange(B, dtype=jnp.int32) * P for _ in ln_emb]
    lS_i = []
    for n in ln_emb:
        key, k = jax.random.split(key)
        lS_i.append(jax.random.randint(k, (B, P), 0, n, dtype=jnp.int32))

    out = dlrm_forward(dense_x, lS_i, bot_params, top_params, emb_tables)
    out = jax.block_until_ready(out)

    ref = dlrm_reference(dense_x, lS_i, bot_params, top_params, emb_tables)
    # bf16 matmul operands (f32 accumulation) -> relaxed tolerance vs f32 ref.
    np.testing.assert_allclose(np.asarray(out), np.asarray(ref),
                               rtol=5e-2, atol=2e-2)
    assert out.shape == (B, 1)
    print("KERNEL_OK")
</pallas_src>

<mosaic_0001>
module attributes {stable_mosaic.version = 11 : i64} {
  func.func @_dlrm_fused_kernel(%arg0: i32, %arg1: memref<8x13xf32, #tpu.memory_space<vmem>>, %arg2: memref<8x12xi32, #tpu.memory_space<vmem>>, %arg3: memref<128x128xbf16, #tpu.memory_space<vmem>>, %arg4: memref<128x128xbf16, #tpu.memory_space<vmem>>, %arg5: memref<128x128xbf16, #tpu.memory_space<vmem>>, %arg6: memref<128x128xbf16, #tpu.memory_space<vmem>>, %arg7: memref<1x128xf32, #tpu.memory_space<vmem>>, %arg8: memref<128x128xbf16, #tpu.memory_space<vmem>>, %arg9: memref<1x128xf32, #tpu.memory_space<vmem>>, %arg10: memref<128x128xbf16, #tpu.memory_space<vmem>>, %arg11: memref<128x128xbf16, #tpu.memory_space<vmem>>, %arg12: memref<1x128xf32, #tpu.memory_space<vmem>>, %arg13: memref<128x128xbf16, #tpu.memory_space<vmem>>, %arg14: memref<1x128xf32, #tpu.memory_space<vmem>>, %arg15: memref<8x1xf32, #tpu.memory_space<vmem>>) attributes {dimension_semantics = [#tpu.dimension_semantics<parallel>], iteration_bounds = array<i64: 1>, scalar_prefetch = 0 : i64, scratch_operands = 0 : i64, tpu.core_type = #tpu.core_type<tc>, window_params = [{transform_indices = @transform_0, window_bounds = array<i64: 8, 13>}, {transform_indices = @transform_1, window_bounds = array<i64: 8, 12>}, {pipeline_mode = #tpu.pipeline_mode<synchronous>, transform_indices = @transform_2, window_bounds = array<i64: 128, 128>}, {pipeline_mode = #tpu.pipeline_mode<synchronous>, transform_indices = @transform_3, window_bounds = array<i64: 128, 128>}, {pipeline_mode = #tpu.pipeline_mode<synchronous>, transform_indices = @transform_4, window_bounds = array<i64: 128, 128>}, {pipeline_mode = #tpu.pipeline_mode<synchronous>, transform_indices = @transform_5, window_bounds = array<i64: 128, 128>}, {pipeline_mode = #tpu.pipeline_mode<synchronous>, transform_indices = @transform_6, window_bounds = array<i64: 1, 128>}, {pipeline_mode = #tpu.pipeline_mode<synchronous>, transform_indices = @transform_7, window_bounds = array<i64: 128, 128>}, {pipeline_mode = #tpu.pipeline_mode<synchronous>, transform_indices = @transform_8, window_bounds = array<i64: 1, 128>}, {pipeline_mode = #tpu.pipeline_mode<synchronous>, transform_indices = @transform_9, window_bounds = array<i64: 128, 128>}, {pipeline_mode = #tpu.pipeline_mode<synchronous>, transform_indices = @transform_10, window_bounds = array<i64: 128, 128>}, {pipeline_mode = #tpu.pipeline_mode<synchronous>, transform_indices = @transform_11, window_bounds = array<i64: 1, 128>}, {pipeline_mode = #tpu.pipeline_mode<synchronous>, transform_indices = @transform_12, window_bounds = array<i64: 128, 128>}, {pipeline_mode = #tpu.pipeline_mode<synchronous>, transform_indices = @transform_13, window_bounds = array<i64: 1, 128>}, {transform_indices = @transform_14, window_bounds = array<i64: 8, 1>}]} {
    %c0 = arith.constant 0 : index
    %c0_0 = arith.constant 0 : index
    %0 = vector.load %arg1[%c0, %c0_0] : memref<8x13xf32, #tpu.memory_space<vmem>>, vector<8x13xf32>
    %cst = arith.constant 0.000000e+00 : f32
    %1 = vector.broadcast %cst : f32 to vector<8x115xf32>
    %2 = tpu.concatenate %0, %1 in 1 : vector<8x13xf32>, vector<8x115xf32> -> vector<8x128xf32>
    %3 = arith.truncf %2 : vector<8x128xf32> to vector<8x128xbf16>
    %c0_1 = arith.constant 0 : index
    %c0_2 = arith.constant 0 : index
    %4 = vector.load %arg6[%c0_1, %c0_2] : memref<128x128xbf16, #tpu.memory_space<vmem>>, vector<128x128xbf16>
    %cst_3 = arith.constant dense<0.000000e+00> : vector<8x128xf32>
    %5 = tpu.matmul %3, %4, %cst_3 {dimension_numbers = #tpu.dot_dimension_numbers<[1], [0], [0], [1], [0, 0, 1, 1], [], []>} : vector<8x128xbf16>, vector<128x128xbf16>, vector<8x128xf32> -> vector<8x128xf32>
    %c0_4 = arith.constant 0 : index
    %c0_5 = arith.constant 0 : index
    %6 = vector.load %arg7[%c0_4, %c0_5] : memref<1x128xf32, #tpu.memory_space<vmem>>, vector<1x128xf32>
    %7 = vector.broadcast %6 : vector<1x128xf32> to vector<8x128xf32>
    %8 = arith.addf %5, %7 : vector<8x128xf32>
    %cst_6 = arith.constant 0.000000e+00 : f32
    %9 = vector.broadcast %cst_6 : f32 to vector<8x128xf32>
    %10 = arith.maximumf %8, %9 : vector<8x128xf32>
    %11 = arith.truncf %10 : vector<8x128xf32> to vector<8x128xbf16>
    %c0_7 = arith.constant 0 : index
    %c0_8 = arith.constant 0 : index
    %12 = vector.load %arg8[%c0_7, %c0_8] : memref<128x128xbf16, #tpu.memory_space<vmem>>, vector<128x128xbf16>
    %cst_9 = arith.constant dense<0.000000e+00> : vector<8x128xf32>
    %13 = tpu.matmul %11, %12, %cst_9 {dimension_numbers = #tpu.dot_dimension_numbers<[1], [0], [0], [1], [0, 0, 1, 1], [], []>} : vector<8x128xbf16>, vector<128x128xbf16>, vector<8x128xf32> -> vector<8x128xf32>
    %c0_10 = arith.constant 0 : index
    %c0_11 = arith.constant 0 : index
    %14 = vector.load %arg9[%c0_10, %c0_11] : memref<1x128xf32, #tpu.memory_space<vmem>>, vector<1x128xf32>
    %15 = vector.broadcast %14 : vector<1x128xf32> to vector<8x128xf32>
    %16 = arith.addf %13, %15 : vector<8x128xf32>
    %cst_12 = arith.constant 0.000000e+00 : f32
    %17 = vector.broadcast %cst_12 : f32 to vector<8x128xf32>
    %18 = arith.maximumf %16, %17 : vector<8x128xf32>
    %19 = arith.truncf %18 : vector<8x128xf32> to vector<8x128xbf16>
    %c0_13 = arith.constant 0 : index
    %c0_14 = arith.constant 0 : index
    %20 = vector.load %arg2[%c0_13, %c0_14] : memref<8x12xi32, #tpu.memory_space<vmem>>, vector<8x12xi32>
    %c0_15 = arith.constant 0 : index
    %c0_16 = arith.constant 0 : index
    %21 = vector.load %arg3[%c0_15, %c0_16] : memref<128x128xbf16, #tpu.memory_space<vmem>>, vector<128x128xbf16>
    %22 = tpu.iota {dimensions = array<i32: 1>} : vector<8x128xi32>
    %c0_i32 = arith.constant 0 : i32
    %23 = vector.broadcast %c0_i32 : i32 to vector<8x128xi32>
    %24 = vector.extract_strided_slice %20 {offsets = [0, 0], sizes = [8, 1], strides = [1, 1]} : vector<8x12xi32> to vector<8x1xi32>
    %25 = vector.broadcast %24 : vector<8x1xi32> to vector<8x128xi32>
    %26 = arith.cmpi eq, %22, %25 : vector<8x128xi32>
    %27 = arith.extui %26 : vector<8x128xi1> to vector<8x128xi32>
    %28 = arith.addi %23, %27 : vector<8x128xi32>
    %29 = vector.extract_strided_slice %20 {offsets = [0, 1], sizes = [8, 1], strides = [1, 1]} : vector<8x12xi32> to vector<8x1xi32>
    %30 = vector.broadcast %29 : vector<8x1xi32> to vector<8x128xi32>
    %31 = arith.cmpi eq, %22, %30 : vector<8x128xi32>
    %32 = arith.extui %31 : vector<8x128xi1> to vector<8x128xi32>
    %33 = arith.addi %28, %32 : vector<8x128xi32>
    %34 = vector.extract_strided_slice %20 {offsets = [0, 2], sizes = [8, 1], strides = [1, 1]} : vector<8x12xi32> to vector<8x1xi32>
    %35 = vector.broadcast %34 : vector<8x1xi32> to vector<8x128xi32>
    %36 = arith.cmpi eq, %22, %35 : vector<8x128xi32>
    %37 = arith.extui %36 : vector<8x128xi1> to vector<8x128xi32>
    %38 = arith.addi %33, %37 : vector<8x128xi32>
    %39 = vector.extract_strided_slice %20 {offsets = [0, 3], sizes = [8, 1], strides = [1, 1]} : vector<8x12xi32> to vector<8x1xi32>
    %40 = vector.broadcast %39 : vector<8x1xi32> to vector<8x128xi32>
    %41 = arith.cmpi eq, %22, %40 : vector<8x128xi32>
    %42 = arith.extui %41 : vector<8x128xi1> to vector<8x128xi32>
    %43 = arith.addi %38, %42 : vector<8x128xi32>
    %44 = arith.sitofp %43 : vector<8x128xi32> to vector<8x128xf32>
    %45 = arith.truncf %44 : vector<8x128xf32> to vector<8x128xbf16>
    %cst_17 = arith.constant dense<0.000000e+00> : vector<8x128xf32>
    %46 = tpu.matmul %45, %21, %cst_17 {dimension_numbers = #tpu.dot_dimension_numbers<[1], [0], [0], [1], [0, 0, 1, 1], [], []>} : vector<8x128xbf16>, vector<128x128xbf16>, vector<8x128xf32> -> vector<8x128xf32>
    %c0_18 = arith.constant 0 : index
    %c0_19 = arith.constant 0 : index
    %47 = vector.load %arg4[%c0_18, %c0_19] : memref<128x128xbf16, #tpu.memory_space<vmem>>, vector<128x128xbf16>
    %c0_i32_20 = arith.constant 0 : i32
    %48 = vector.broadcast %c0_i32_20 : i32 to vector<8x128xi32>
    %49 = vector.extract_strided_slice %20 {offsets = [0, 4], sizes = [8, 1], strides = [1, 1]} : vector<8x12xi32> to vector<8x1xi32>
    %50 = vector.broadcast %49 : vector<8x1xi32> to vector<8x128xi32>
    %51 = arith.cmpi eq, %22, %50 : vector<8x128xi32>
    %52 = arith.extui %51 : vector<8x128xi1> to vector<8x128xi32>
    %53 = arith.addi %48, %52 : vector<8x128xi32>
    %54 = vector.extract_strided_slice %20 {offsets = [0, 5], sizes = [8, 1], strides = [1, 1]} : vector<8x12xi32> to vector<8x1xi32>
    %55 = vector.broadcast %54 : vector<8x1xi32> to vector<8x128xi32>
    %56 = arith.cmpi eq, %22, %55 : vector<8x128xi32>
    %57 = arith.extui %56 : vector<8x128xi1> to vector<8x128xi32>
    %58 = arith.addi %53, %57 : vector<8x128xi32>
    %59 = vector.extract_strided_slice %20 {offsets = [0, 6], sizes = [8, 1], strides = [1, 1]} : vector<8x12xi32> to vector<8x1xi32>
    %60 = vector.broadcast %59 : vector<8x1xi32> to vector<8x128xi32>
    %61 = arith.cmpi eq, %22, %60 : vector<8x128xi32>
    %62 = arith.extui %61 : vector<8x128xi1> to vector<8x128xi32>
    %63 = arith.addi %58, %62 : vector<8x128xi32>
    %64 = vector.extract_strided_slice %20 {offsets = [0, 7], sizes = [8, 1], strides = [1, 1]} : vector<8x12xi32> to vector<8x1xi32>
    %65 = vector.broadcast %64 : vector<8x1xi32> to vector<8x128xi32>
    %66 = arith.cmpi eq, %22, %65 : vector<8x128xi32>
    %67 = arith.extui %66 : vector<8x128xi1> to vector<8x128xi32>
    %68 = arith.addi %63, %67 : vector<8x128xi32>
    %69 = arith.sitofp %68 : vector<8x128xi32> to vector<8x128xf32>
    %70 = arith.truncf %69 : vector<8x128xf32> to vector<8x128xbf16>
    %cst_21 = arith.constant dense<0.000000e+00> : vector<8x128xf32>
    %71 = tpu.matmul %70, %47, %cst_21 {dimension_numbers = #tpu.dot_dimension_numbers<[1], [0], [0], [1], [0, 0, 1, 1], [], []>} : vector<8x128xbf16>, vector<128x128xbf16>, vector<8x128xf32> -> vector<8x128xf32>
    %c0_22 = arith.constant 0 : index
    %c0_23 = arith.constant 0 : index
    %72 = vector.load %arg5[%c0_22, %c0_23] : memref<128x128xbf16, #tpu.memory_space<vmem>>, vector<128x128xbf16>
    %c0_i32_24 = arith.constant 0 : i32
    %73 = vector.broadcast %c0_i32_24 : i32 to vector<8x128xi32>
    %74 = vector.extract_strided_slice %20 {offsets = [0, 8], sizes = [8, 1], strides = [1, 1]} : vector<8x12xi32> to vector<8x1xi32>
    %75 = vector.broadcast %74 : vector<8x1xi32> to vector<8x128xi32>
    %76 = arith.cmpi eq, %22, %75 : vector<8x128xi32>
    %77 = arith.extui %76 : vector<8x128xi1> to vector<8x128xi32>
    %78 = arith.addi %73, %77 : vector<8x128xi32>
    %79 = vector.extract_strided_slice %20 {offsets = [0, 9], sizes = [8, 1], strides = [1, 1]} : vector<8x12xi32> to vector<8x1xi32>
    %80 = vector.broadcast %79 : vector<8x1xi32> to vector<8x128xi32>
    %81 = arith.cmpi eq, %22, %80 : vector<8x128xi32>
    %82 = arith.extui %81 : vector<8x128xi1> to vector<8x128xi32>
    %83 = arith.addi %78, %82 : vector<8x128xi32>
    %84 = vector.extract_strided_slice %20 {offsets = [0, 10], sizes = [8, 1], strides = [1, 1]} : vector<8x12xi32> to vector<8x1xi32>
    %85 = vector.broadcast %84 : vector<8x1xi32> to vector<8x128xi32>
    %86 = arith.cmpi eq, %22, %85 : vector<8x128xi32>
    %87 = arith.extui %86 : vector<8x128xi1> to vector<8x128xi32>
    %88 = arith.addi %83, %87 : vector<8x128xi32>
    %89 = vector.extract_strided_slice %20 {offsets = [0, 11], sizes = [8, 1], strides = [1, 1]} : vector<8x12xi32> to vector<8x1xi32>
    %90 = vector.broadcast %89 : vector<8x1xi32> to vector<8x128xi32>
    %91 = arith.cmpi eq, %22, %90 : vector<8x128xi32>
    %92 = arith.extui %91 : vector<8x128xi1> to vector<8x128xi32>
    %93 = arith.addi %88, %92 : vector<8x128xi32>
    %94 = arith.sitofp %93 : vector<8x128xi32> to vector<8x128xf32>
    %95 = arith.truncf %94 : vector<8x128xf32> to vector<8x128xbf16>
    %cst_25 = arith.constant dense<0.000000e+00> : vector<8x128xf32>
    %96 = tpu.matmul %95, %72, %cst_25 {dimension_numbers = #tpu.dot_dimension_numbers<[1], [0], [0], [1], [0, 0, 1, 1], [], []>} : vector<8x128xbf16>, vector<128x128xbf16>, vector<8x128xf32> -> vector<8x128xf32>
    %97 = arith.mulf %46, %18 : vector<8x128xf32>
    %cst_26 = arith.constant dense<0.000000e+00> : vector<8xf32>
    %98 = vector.multi_reduction <add>, %97, %cst_26 [1] : vector<8x128xf32> to vector<8xf32>
    %99 = vector.shape_cast %98 : vector<8xf32> to vector<8x1xf32>
    %100 = arith.mulf %71, %18 : vector<8x128xf32>
    %cst_27 = arith.constant dense<0.000000e+00> : vector<8xf32>
    %101 = vector.multi_reduction <add>, %100, %cst_27 [1] : vector<8x128xf32> to vector<8xf32>
    %102 = vector.shape_cast %101 : vector<8xf32> to vector<8x1xf32>
    %103 = arith.mulf %71, %46 : vector<8x128xf32>
    %cst_28 = arith.constant dense<0.000000e+00> : vector<8xf32>
    %104 = vector.multi_reduction <add>, %103, %cst_28 [1] : vector<8x128xf32> to vector<8xf32>
    %105 = vector.shape_cast %104 : vector<8xf32> to vector<8x1xf32>
    %106 = arith.mulf %96, %18 : vector<8x128xf32>
    %cst_29 = arith.constant dense<0.000000e+00> : vector<8xf32>
    %107 = vector.multi_reduction <add>, %106, %cst_29 [1] : vector<8x128xf32> to vector<8xf32>
    %108 = vector.shape_cast %107 : vector<8xf32> to vector<8x1xf32>
    %109 = arith.mulf %96, %46 : vector<8x128xf32>
    %cst_30 = arith.constant dense<0.000000e+00> : vector<8xf32>
    %110 = vector.multi_reduction <add>, %109, %cst_30 [1] : vector<8x128xf32> to vector<8xf32>
    %111 = vector.shape_cast %110 : vector<8xf32> to vector<8x1xf32>
    %112 = arith.mulf %96, %71 : vector<8x128xf32>
    %cst_31 = arith.constant dense<0.000000e+00> : vector<8xf32>
    %113 = vector.multi_reduction <add>, %112, %cst_31 [1] : vector<8x128xf32> to vector<8xf32>
    %114 = vector.shape_cast %113 : vector<8xf32> to vector<8x1xf32>
    %cst_32 = arith.constant 0.000000e+00 : f32
    %115 = vector.broadcast %cst_32 : f32 to vector<8x122xf32>
    %116 = tpu.concatenate %99, %102, %105, %108, %111, %114, %115 in 1 : vector<8x1xf32>, vector<8x1xf32>, vector<8x1xf32>, vector<8x1xf32>, vector<8x1xf32>, vector<8x1xf32>, vector<8x122xf32> -> vector<8x128xf32>
    %117 = arith.truncf %116 : vector<8x128xf32> to vector<8x128xbf16>
    %c0_33 = arith.constant 0 : index
    %c0_34 = arith.constant 0 : index
    %118 = vector.load %arg10[%c0_33, %c0_34] : memref<128x128xbf16, #tpu.memory_space<vmem>>, vector<128x128xbf16>
    %cst_35 = arith.constant dense<0.000000e+00> : vector<8x128xf32>
    %119 = tpu.matmul %19, %118, %cst_35 {dimension_numbers = #tpu.dot_dimension_numbers<[1], [0], [0], [1], [0, 0, 1, 1], [], []>} : vector<8x128xbf16>, vector<128x128xbf16>, vector<8x128xf32> -> vector<8x128xf32>
    %c0_36 = arith.constant 0 : index
    %c0_37 = arith.constant 0 : index
    %120 = vector.load %arg11[%c0_36, %c0_37] : memref<128x128xbf16, #tpu.memory_space<vmem>>, vector<128x128xbf16>
    %cst_38 = arith.constant dense<0.000000e+00> : vector<8x128xf32>
    %121 = tpu.matmul %117, %120, %cst_38 {dimension_numbers = #tpu.dot_dimension_numbers<[1], [0], [0], [1], [0, 0, 1, 1], [], []>} : vector<8x128xbf16>, vector<128x128xbf16>, vector<8x128xf32> -> vector<8x128xf32>
    %122 = arith.addf %119, %121 : vector<8x128xf32>
    %c0_39 = arith.constant 0 : index
    %c0_40 = arith.constant 0 : index
    %123 = vector.load %arg12[%c0_39, %c0_40] : memref<1x128xf32, #tpu.memory_space<vmem>>, vector<1x128xf32>
    %124 = vector.broadcast %123 : vector<1x128xf32> to vector<8x128xf32>
    %125 = arith.addf %122, %124 : vector<8x128xf32>
    %cst_41 = arith.constant 0.000000e+00 : f32
    %126 = vector.broadcast %cst_41 : f32 to vector<8x128xf32>
    %127 = arith.maximumf %125, %126 : vector<8x128xf32>
    %128 = arith.truncf %127 : vector<8x128xf32> to vector<8x128xbf16>
    %c0_42 = arith.constant 0 : index
    %c0_43 = arith.constant 0 : index
    %129 = vector.load %arg13[%c0_42, %c0_43] : memref<128x128xbf16, #tpu.memory_space<vmem>>, vector<128x128xbf16>
    %cst_44 = arith.constant dense<0.000000e+00> : vector<8x128xf32>
    %130 = tpu.matmul %128, %129, %cst_44 {dimension_numbers = #tpu.dot_dimension_numbers<[1], [0], [0], [1], [0, 0, 1, 1], [], []>} : vector<8x128xbf16>, vector<128x128xbf16>, vector<8x128xf32> -> vector<8x128xf32>
    %c0_45 = arith.constant 0 : index
    %c0_46 = arith.constant 0 : index
    %131 = vector.load %arg14[%c0_45, %c0_46] : memref<1x128xf32, #tpu.memory_space<vmem>>, vector<1x128xf32>
    %132 = vector.broadcast %131 : vector<1x128xf32> to vector<8x128xf32>
    %133 = arith.addf %130, %132 : vector<8x128xf32>
    %134 = arith.negf %133 : vector<8x128xf32>
    %135 = math.exp %134 : vector<8x128xf32>
    %cst_47 = arith.constant 1.000000e+00 : f32
    %136 = vector.broadcast %cst_47 : f32 to vector<8x128xf32>
    %137 = arith.addf %136, %135 : vector<8x128xf32>
    %138 = arith.divf %136, %137 : vector<8x128xf32>
    %139 = vector.extract_strided_slice %138 {offsets = [0, 0], sizes = [8, 1], strides = [1, 1]} : vector<8x128xf32> to vector<8x1xf32>
    %c0_48 = arith.constant 0 : index
    %c0_49 = arith.constant 0 : index
    %140 = vector.load %arg15[%c0_48, %c0_49] : memref<8x1xf32, #tpu.memory_space<vmem>>, vector<8x1xf32>
    tpu.vector_store %arg15[%c0_48, %c0_49], %139 {strides = array<i32>} : memref<8x1xf32, #tpu.memory_space<vmem>>, vector<8x1xf32>,
    return
  }
  func.func @transform_0(%arg0: i32) -> (i32, i32) {
    %c0_i32 = arith.constant 0 : i32
    %c0_i32_0 = arith.constant 0 : i32
    return %arg0, %c0_i32 : i32, i32
  }
  func.func @transform_1(%arg0: i32) -> (i32, i32) {
    %c0_i32 = arith.constant 0 : i32
    %c0_i32_0 = arith.constant 0 : i32
    return %arg0, %c0_i32 : i32, i32
  }
  func.func @transform_2(%arg0: i32) -> (i32, i32) {
    %c0_i32 = arith.constant 0 : i32
    %c0_i32_0 = arith.constant 0 : i32
    %c0_i32_1 = arith.constant 0 : i32
    return %c0_i32, %c0_i32_0 : i32, i32
  }
  func.func @transform_3(%arg0: i32) -> (i32, i32) {
    %c0_i32 = arith.constant 0 : i32
    %c0_i32_0 = arith.constant 0 : i32
    %c0_i32_1 = arith.constant 0 : i32
    return %c0_i32, %c0_i32_0 : i32, i32
  }
  func.func @transform_4(%arg0: i32) -> (i32, i32) {
    %c0_i32 = arith.constant 0 : i32
    %c0_i32_0 = arith.constant 0 : i32
    %c0_i32_1 = arith.constant 0 : i32
    return %c0_i32, %c0_i32_0 : i32, i32
  }
  func.func @transform_5(%arg0: i32) -> (i32, i32) {
    %c0_i32 = arith.constant 0 : i32
    %c0_i32_0 = arith.constant 0 : i32
    %c0_i32_1 = arith.constant 0 : i32
    return %c0_i32, %c0_i32_0 : i32, i32
  }
  func.func @transform_6(%arg0: i32) -> (i32, i32) {
    %c0_i32 = arith.constant 0 : i32
    %c0_i32_0 = arith.constant 0 : i32
    %c0_i32_1 = arith.constant 0 : i32
    return %c0_i32, %c0_i32_0 : i32, i32
  }
  func.func @transform_7(%arg0: i32) -> (i32, i32) {
    %c0_i32 = arith.constant 0 : i32
    %c0_i32_0 = arith.constant 0 : i32
    %c0_i32_1 = arith.constant 0 : i32
    return %c0_i32, %c0_i32_0 : i32, i32
  }
  func.func @transform_8(%arg0: i32) -> (i32, i32) {
    %c0_i32 = arith.constant 0 : i32
    %c0_i32_0 = arith.constant 0 : i32
    %c0_i32_1 = arith.constant 0 : i32
    return %c0_i32, %c0_i32_0 : i32, i32
  }
  func.func @transform_9(%arg0: i32) -> (i32, i32) {
    %c0_i32 = arith.constant 0 : i32
    %c0_i32_0 = arith.constant 0 : i32
    %c0_i32_1 = arith.constant 0 : i32
    return %c0_i32, %c0_i32_0 : i32, i32
  }
  func.func @transform_10(%arg0: i32) -> (i32, i32) {
    %c0_i32 = arith.constant 0 : i32
    %c0_i32_0 = arith.constant 0 : i32
    %c0_i32_1 = arith.constant 0 : i32
    return %c0_i32, %c0_i32_0 : i32, i32
  }
  func.func @transform_11(%arg0: i32) -> (i32, i32) {
    %c0_i32 = arith.constant 0 : i32
    %c0_i32_0 = arith.constant 0 : i32
    %c0_i32_1 = arith.constant 0 : i32
    return %c0_i32, %c0_i32_0 : i32, i32
  }
  func.func @transform_12(%arg0: i32) -> (i32, i32) {
    %c0_i32 = arith.constant 0 : i32
    %c0_i32_0 = arith.constant 0 : i32
    %c0_i32_1 = arith.constant 0 : i32
    return %c0_i32, %c0_i32_0 : i32, i32
  }
  func.func @transform_13(%arg0: i32) -> (i32, i32) {
    %c0_i32 = arith.constant 0 : i32
    %c0_i32_0 = arith.constant 0 : i32
    %c0_i32_1 = arith.constant 0 : i32
    return %c0_i32, %c0_i32_0 : i32, i32
  }
  func.func @transform_14(%arg0: i32) -> (i32, i32) {
    %c0_i32 = arith.constant 0 : i32
    %c0_i32_0 = arith.constant 0 : i32
    return %arg0, %c0_i32 : i32, i32
  }
}

module attributes {stable_mosaic.version = 11 : i64} {
  func.func @_dlrm_fused_kernel(%arg0: i32, %arg1: memref<8x13xf32, #tpu.memory_space<vmem>>, %arg2: memref<8x12xi32, #tpu.memory_space<vmem>>, %arg3: memref<128x128xbf16, #tpu.memory_space<vmem>>, %arg4: memref<128x128xbf16, #tpu.memory_space<vmem>>, %arg5: memref<128x128xbf16, #tpu.memory_space<vmem>>, %arg6: memref<128x128xbf16, #tpu.memory_space<vmem>>, %arg7: memref<1x128xf32, #tpu.memory_space<vmem>>, %arg8: memref<128x128xbf16, #tpu.memory_space<vmem>>, %arg9: memref<1x128xf32, #tpu.memory_space<vmem>>, %arg10: memref<128x128xbf16, #tpu.memory_space<vmem>>, %arg11: memref<128x128xbf16, #tpu.memory_space<vmem>>, %arg12: memref<1x128xf32, #tpu.memory_space<vmem>>, %arg13: memref<128x128xbf16, #tpu.memory_space<vmem>>, %arg14: memref<1x128xf32, #tpu.memory_space<vmem>>, %arg15: memref<8x1xf32, #tpu.memory_space<vmem>>) attributes {dimension_semantics = [#tpu.dimension_semantics<parallel>], iteration_bounds = array<i64: 1>, scalar_prefetch = 0 : i64, scratch_operands = 0 : i64, tpu.core_type = #tpu.core_type<tc>, window_params = [{transform_indices = @transform_0, window_bounds = array<i64: 8, 13>}, {transform_indices = @transform_1, window_bounds = array<i64: 8, 12>}, {pipeline_mode = #tpu.pipeline_mode<synchronous>, transform_indices = @transform_2, window_bounds = array<i64: 128, 128>}, {pipeline_mode = #tpu.pipeline_mode<synchronous>, transform_indices = @transform_3, window_bounds = array<i64: 128, 128>}, {pipeline_mode = #tpu.pipeline_mode<synchronous>, transform_indices = @transform_4, window_bounds = array<i64: 128, 128>}, {pipeline_mode = #tpu.pipeline_mode<synchronous>, transform_indices = @transform_5, window_bounds = array<i64: 128, 128>}, {pipeline_mode = #tpu.pipeline_mode<synchronous>, transform_indices = @transform_6, window_bounds = array<i64: 1, 128>}, {pipeline_mode = #tpu.pipeline_mode<synchronous>, transform_indices = @transform_7, window_bounds = array<i64: 128, 128>}, {pipeline_mode = #tpu.pipeline_mode<synchronous>, transform_indices = @transform_8, window_bounds = array<i64: 1, 128>}, {pipeline_mode = #tpu.pipeline_mode<synchronous>, transform_indices = @transform_9, window_bounds = array<i64: 128, 128>}, {pipeline_mode = #tpu.pipeline_mode<synchronous>, transform_indices = @transform_10, window_bounds = array<i64: 128, 128>}, {pipeline_mode = #tpu.pipeline_mode<synchronous>, transform_indices = @transform_11, window_bounds = array<i64: 1, 128>}, {pipeline_mode = #tpu.pipeline_mode<synchronous>, transform_indices = @transform_12, window_bounds = array<i64: 128, 128>}, {pipeline_mode = #tpu.pipeline_mode<synchronous>, transform_indices = @transform_13, window_bounds = array<i64: 1, 128>}, {transform_indices = @transform_14, window_bounds = array<i64: 8, 1>}]} {
    %c0 = arith.constant 0 : index
    %c0_0 = arith.constant 0 : index
    %0 = vector.load %arg1[%c0, %c0_0] : memref<8x13xf32, #tpu.memory_space<vmem>>, vector<8x13xf32>
    %cst = arith.constant 0.000000e+00 : f32
    %1 = vector.broadcast %cst : f32 to vector<8x115xf32>
    %2 = tpu.concatenate %0, %1 in 1 : vector<8x13xf32>, vector<8x115xf32> -> vector<8x128xf32>
    %3 = arith.truncf %2 : vector<8x128xf32> to vector<8x128xbf16>
    %c0_1 = arith.constant 0 : index
    %c0_2 = arith.constant 0 : index
    %4 = vector.load %arg6[%c0_1, %c0_2] : memref<128x128xbf16, #tpu.memory_space<vmem>>, vector<128x128xbf16>
    %cst_3 = arith.constant dense<0.000000e+00> : vector<8x128xf32>
    %5 = tpu.matmul %3, %4, %cst_3 {dimension_numbers = #tpu.dot_dimension_numbers<[1], [0], [0], [1], [0, 0, 1, 1], [], []>} : vector<8x128xbf16>, vector<128x128xbf16>, vector<8x128xf32> -> vector<8x128xf32>
    %c0_4 = arith.constant 0 : index
    %c0_5 = arith.constant 0 : index
    %6 = vector.load %arg7[%c0_4, %c0_5] : memref<1x128xf32, #tpu.memory_space<vmem>>, vector<1x128xf32>
    %7 = vector.broadcast %6 : vector<1x128xf32> to vector<8x128xf32>
    %8 = arith.addf %5, %7 : vector<8x128xf32>
    %cst_6 = arith.constant 0.000000e+00 : f32
    %9 = vector.broadcast %cst_6 : f32 to vector<8x128xf32>
    %10 = arith.maximumf %8, %9 : vector<8x128xf32>
    %11 = arith.truncf %10 : vector<8x128xf32> to vector<8x128xbf16>
    %c0_7 = arith.constant 0 : index
    %c0_8 = arith.constant 0 : index
    %12 = vector.load %arg8[%c0_7, %c0_8] : memref<128x128xbf16, #tpu.memory_space<vmem>>, vector<128x128xbf16>
    %cst_9 = arith.constant dense<0.000000e+00> : vector<8x128xf32>
    %13 = tpu.matmul %11, %12, %cst_9 {dimension_numbers = #tpu.dot_dimension_numbers<[1], [0], [0], [1], [0, 0, 1, 1], [], []>} : vector<8x128xbf16>, vector<128x128xbf16>, vector<8x128xf32> -> vector<8x128xf32>
    %c0_10 = arith.constant 0 : index
    %c0_11 = arith.constant 0 : index
    %14 = vector.load %arg9[%c0_10, %c0_11] : memref<1x128xf32, #tpu.memory_space<vmem>>, vector<1x128xf32>
    %15 = vector.broadcast %14 : vector<1x128xf32> to vector<8x128xf32>
    %16 = arith.addf %13, %15 : vector<8x128xf32>
    %cst_12 = arith.constant 0.000000e+00 : f32
    %17 = vector.broadcast %cst_12 : f32 to vector<8x128xf32>
    %18 = arith.maximumf %16, %17 : vector<8x128xf32>
    %19 = arith.truncf %18 : vector<8x128xf32> to vector<8x128xbf16>
    %c0_13 = arith.constant 0 : index
    %c0_14 = arith.constant 0 : index
    %20 = vector.load %arg2[%c0_13, %c0_14] : memref<8x12xi32, #tpu.memory_space<vmem>>, vector<8x12xi32>
    %c0_15 = arith.constant 0 : index
    %c0_16 = arith.constant 0 : index
    %21 = vector.load %arg3[%c0_15, %c0_16] : memref<128x128xbf16, #tpu.memory_space<vmem>>, vector<128x128xbf16>
    %22 = tpu.iota {dimensions = array<i32: 1>} : vector<8x128xi32>
    %c0_i32 = arith.constant 0 : i32
    %23 = vector.broadcast %c0_i32 : i32 to vector<8x128xi32>
    %24 = vector.extract_strided_slice %20 {offsets = [0, 0], sizes = [8, 1], strides = [1, 1]} : vector<8x12xi32> to vector<8x1xi32>
    %25 = vector.broadcast %24 : vector<8x1xi32> to vector<8x128xi32>
    %26 = arith.cmpi eq, %22, %25 : vector<8x128xi32>
    %27 = arith.extui %26 : vector<8x128xi1> to vector<8x128xi32>
    %28 = arith.addi %23, %27 : vector<8x128xi32>
    %29 = vector.extract_strided_slice %20 {offsets = [0, 1], sizes = [8, 1], strides = [1, 1]} : vector<8x12xi32> to vector<8x1xi32>
    %30 = vector.broadcast %29 : vector<8x1xi32> to vector<8x128xi32>
    %31 = arith.cmpi eq, %22, %30 : vector<8x128xi32>
    %32 = arith.extui %31 : vector<8x128xi1> to vector<8x128xi32>
    %33 = arith.addi %28, %32 : vector<8x128xi32>
    %34 = vector.extract_strided_slice %20 {offsets = [0, 2], sizes = [8, 1], strides = [1, 1]} : vector<8x12xi32> to vector<8x1xi32>
    %35 = vector.broadcast %34 : vector<8x1xi32> to vector<8x128xi32>
    %36 = arith.cmpi eq, %22, %35 : vector<8x128xi32>
    %37 = arith.extui %36 : vector<8x128xi1> to vector<8x128xi32>
    %38 = arith.addi %33, %37 : vector<8x128xi32>
    %39 = vector.extract_strided_slice %20 {offsets = [0, 3], sizes = [8, 1], strides = [1, 1]} : vector<8x12xi32> to vector<8x1xi32>
    %40 = vector.broadcast %39 : vector<8x1xi32> to vector<8x128xi32>
    %41 = arith.cmpi eq, %22, %40 : vector<8x128xi32>
    %42 = arith.extui %41 : vector<8x128xi1> to vector<8x128xi32>
    %43 = arith.addi %38, %42 : vector<8x128xi32>
    %44 = arith.sitofp %43 : vector<8x128xi32> to vector<8x128xf32>
    %45 = arith.truncf %44 : vector<8x128xf32> to vector<8x128xbf16>
    %cst_17 = arith.constant dense<0.000000e+00> : vector<8x128xf32>
    %46 = tpu.matmul %45, %21, %cst_17 {dimension_numbers = #tpu.dot_dimension_numbers<[1], [0], [0], [1], [0, 0, 1, 1], [], []>} : vector<8x128xbf16>, vector<128x128xbf16>, vector<8x128xf32> -> vector<8x128xf32>
    %c0_18 = arith.constant 0 : index
    %c0_19 = arith.constant 0 : index
    %47 = vector.load %arg4[%c0_18, %c0_19] : memref<128x128xbf16, #tpu.memory_space<vmem>>, vector<128x128xbf16>
    %c0_i32_20 = arith.constant 0 : i32
    %48 = vector.broadcast %c0_i32_20 : i32 to vector<8x128xi32>
    %49 = vector.extract_strided_slice %20 {offsets = [0, 4], sizes = [8, 1], strides = [1, 1]} : vector<8x12xi32> to vector<8x1xi32>
    %50 = vector.broadcast %49 : vector<8x1xi32> to vector<8x128xi32>
    %51 = arith.cmpi eq, %22, %50 : vector<8x128xi32>
    %52 = arith.extui %51 : vector<8x128xi1> to vector<8x128xi32>
    %53 = arith.addi %48, %52 : vector<8x128xi32>
    %54 = vector.extract_strided_slice %20 {offsets = [0, 5], sizes = [8, 1], strides = [1, 1]} : vector<8x12xi32> to vector<8x1xi32>
    %55 = vector.broadcast %54 : vector<8x1xi32> to vector<8x128xi32>
    %56 = arith.cmpi eq, %22, %55 : vector<8x128xi32>
    %57 = arith.extui %56 : vector<8x128xi1> to vector<8x128xi32>
    %58 = arith.addi %53, %57 : vector<8x128xi32>
    %59 = vector.extract_strided_slice %20 {offsets = [0, 6], sizes = [8, 1], strides = [1, 1]} : vector<8x12xi32> to vector<8x1xi32>
    %60 = vector.broadcast %59 : vector<8x1xi32> to vector<8x128xi32>
    %61 = arith.cmpi eq, %22, %60 : vector<8x128xi32>
    %62 = arith.extui %61 : vector<8x128xi1> to vector<8x128xi32>
    %63 = arith.addi %58, %62 : vector<8x128xi32>
    %64 = vector.extract_strided_slice %20 {offsets = [0, 7], sizes = [8, 1], strides = [1, 1]} : vector<8x12xi32> to vector<8x1xi32>
    %65 = vector.broadcast %64 : vector<8x1xi32> to vector<8x128xi32>
    %66 = arith.cmpi eq, %22, %65 : vector<8x128xi32>
    %67 = arith.extui %66 : vector<8x128xi1> to vector<8x128xi32>
    %68 = arith.addi %63, %67 : vector<8x128xi32>
    %69 = arith.sitofp %68 : vector<8x128xi32> to vector<8x128xf32>
    %70 = arith.truncf %69 : vector<8x128xf32> to vector<8x128xbf16>
    %cst_21 = arith.constant dense<0.000000e+00> : vector<8x128xf32>
    %71 = tpu.matmul %70, %47, %cst_21 {dimension_numbers = #tpu.dot_dimension_numbers<[1], [0], [0], [1], [0, 0, 1, 1], [], []>} : vector<8x128xbf16>, vector<128x128xbf16>, vector<8x128xf32> -> vector<8x128xf32>
    %c0_22 = arith.constant 0 : index
    %c0_23 = arith.constant 0 : index
    %72 = vector.load %arg5[%c0_22, %c0_23] : memref<128x128xbf16, #tpu.memory_space<vmem>>, vector<128x128xbf16>
    %c0_i32_24 = arith.constant 0 : i32
    %73 = vector.broadcast %c0_i32_24 : i32 to vector<8x128xi32>
    %74 = vector.extract_strided_slice %20 {offsets = [0, 8], sizes = [8, 1], strides = [1, 1]} : vector<8x12xi32> to vector<8x1xi32>
    %75 = vector.broadcast %74 : vector<8x1xi32> to vector<8x128xi32>
    %76 = arith.cmpi eq, %22, %75 : vector<8x128xi32>
    %77 = arith.extui %76 : vector<8x128xi1> to vector<8x128xi32>
    %78 = arith.addi %73, %77 : vector<8x128xi32>
    %79 = vector.extract_strided_slice %20 {offsets = [0, 9], sizes = [8, 1], strides = [1, 1]} : vector<8x12xi32> to vector<8x1xi32>
    %80 = vector.broadcast %79 : vector<8x1xi32> to vector<8x128xi32>
    %81 = arith.cmpi eq, %22, %80 : vector<8x128xi32>
    %82 = arith.extui %81 : vector<8x128xi1> to vector<8x128xi32>
    %83 = arith.addi %78, %82 : vector<8x128xi32>
    %84 = vector.extract_strided_slice %20 {offsets = [0, 10], sizes = [8, 1], strides = [1, 1]} : vector<8x12xi32> to vector<8x1xi32>
    %85 = vector.broadcast %84 : vector<8x1xi32> to vector<8x128xi32>
    %86 = arith.cmpi eq, %22, %85 : vector<8x128xi32>
    %87 = arith.extui %86 : vector<8x128xi1> to vector<8x128xi32>
    %88 = arith.addi %83, %87 : vector<8x128xi32>
    %89 = vector.extract_strided_slice %20 {offsets = [0, 11], sizes = [8, 1], strides = [1, 1]} : vector<8x12xi32> to vector<8x1xi32>
    %90 = vector.broadcast %89 : vector<8x1xi32> to vector<8x128xi32>
    %91 = arith.cmpi eq, %22, %90 : vector<8x128xi32>
    %92 = arith.extui %91 : vector<8x128xi1> to vector<8x128xi32>
    %93 = arith.addi %88, %92 : vector<8x128xi32>
    %94 = arith.sitofp %93 : vector<8x128xi32> to vector<8x128xf32>
    %95 = arith.truncf %94 : vector<8x128xf32> to vector<8x128xbf16>
    %cst_25 = arith.constant dense<0.000000e+00> : vector<8x128xf32>
    %96 = tpu.matmul %95, %72, %cst_25 {dimension_numbers = #tpu.dot_dimension_numbers<[1], [0], [0], [1], [0, 0, 1, 1], [], []>} : vector<8x128xbf16>, vector<128x128xbf16>, vector<8x128xf32> -> vector<8x128xf32>
    %97 = arith.mulf %46, %18 : vector<8x128xf32>
    %cst_26 = arith.constant dense<0.000000e+00> : vector<8xf32>
    %98 = vector.multi_reduction <add>, %97, %cst_26 [1] : vector<8x128xf32> to vector<8xf32>
    %99 = vector.shape_cast %98 : vector<8xf32> to vector<8x1xf32>
    %100 = arith.mulf %71, %18 : vector<8x128xf32>
    %cst_27 = arith.constant dense<0.000000e+00> : vector<8xf32>
    %101 = vector.multi_reduction <add>, %100, %cst_27 [1] : vector<8x128xf32> to vector<8xf32>
    %102 = vector.shape_cast %101 : vector<8xf32> to vector<8x1xf32>
    %103 = arith.mulf %71, %46 : vector<8x128xf32>
    %cst_28 = arith.constant dense<0.000000e+00> : vector<8xf32>
    %104 = vector.multi_reduction <add>, %103, %cst_28 [1] : vector<8x128xf32> to vector<8xf32>
    %105 = vector.shape_cast %104 : vector<8xf32> to vector<8x1xf32>
    %106 = arith.mulf %96, %18 : vector<8x128xf32>
    %cst_29 = arith.constant dense<0.000000e+00> : vector<8xf32>
    %107 = vector.multi_reduction <add>, %106, %cst_29 [1] : vector<8x128xf32> to vector<8xf32>
    %108 = vector.shape_cast %107 : vector<8xf32> to vector<8x1xf32>
    %109 = arith.mulf %96, %46 : vector<8x128xf32>
    %cst_30 = arith.constant dense<0.000000e+00> : vector<8xf32>
    %110 = vector.multi_reduction <add>, %109, %cst_30 [1] : vector<8x128xf32> to vector<8xf32>
    %111 = vector.shape_cast %110 : vector<8xf32> to vector<8x1xf32>
    %112 = arith.mulf %96, %71 : vector<8x128xf32>
    %cst_31 = arith.constant dense<0.000000e+00> : vector<8xf32>
    %113 = vector.multi_reduction <add>, %112, %cst_31 [1] : vector<8x128xf32> to vector<8xf32>
    %114 = vector.shape_cast %113 : vector<8xf32> to vector<8x1xf32>
    %cst_32 = arith.constant 0.000000e+00 : f32
    %115 = vector.broadcast %cst_32 : f32 to vector<8x122xf32>
    %116 = tpu.concatenate %99, %102, %105, %108, %111, %114, %115 in 1 : vector<8x1xf32>, vector<8x1xf32>, vector<8x1xf32>, vector<8x1xf32>, vector<8x1xf32>, vector<8x1xf32>, vector<8x122xf32> -> vector<8x128xf32>
    %117 = arith.truncf %116 : vector<8x128xf32> to vector<8x128xbf16>
    %c0_33 = arith.constant 0 : index
    %c0_34 = arith.constant 0 : index
    %118 = vector.load %arg10[%c0_33, %c0_34] : memref<128x128xbf16, #tpu.memory_space<vmem>>, vector<128x128xbf16>
    %cst_35 = arith.constant dense<0.000000e+00> : vector<8x128xf32>
    %119 = tpu.matmul %19, %118, %cst_35 {dimension_numbers = #tpu.dot_dimension_numbers<[1], [0], [0], [1], [0, 0, 1, 1], [], []>} : vector<8x128xbf16>, vector<128x128xbf16>, vector<8x128xf32> -> vector<8x128xf32>
    %c0_36 = arith.constant 0 : index
    %c0_37 = arith.constant 0 : index
    %120 = vector.load %arg11[%c0_36, %c0_37] : memref<128x128xbf16, #tpu.memory_space<vmem>>, vector<128x128xbf16>
    %cst_38 = arith.constant dense<0.000000e+00> : vector<8x128xf32>
    %121 = tpu.matmul %117, %120, %cst_38 {dimension_numbers = #tpu.dot_dimension_numbers<[1], [0], [0], [1], [0, 0, 1, 1], [], []>} : vector<8x128xbf16>, vector<128x128xbf16>, vector<8x128xf32> -> vector<8x128xf32>
    %122 = arith.addf %119, %121 : vector<8x128xf32>
    %c0_39 = arith.constant 0 : index
    %c0_40 = arith.constant 0 : index
    %123 = vector.load %arg12[%c0_39, %c0_40] : memref<1x128xf32, #tpu.memory_space<vmem>>, vector<1x128xf32>
    %124 = vector.broadcast %123 : vector<1x128xf32> to vector<8x128xf32>
    %125 = arith.addf %122, %124 : vector<8x128xf32>
    %cst_41 = arith.constant 0.000000e+00 : f32
    %126 = vector.broadcast %cst_41 : f32 to vector<8x128xf32>
    %127 = arith.maximumf %125, %126 : vector<8x128xf32>
    %128 = arith.truncf %127 : vector<8x128xf32> to vector<8x128xbf16>
    %c0_42 = arith.constant 0 : index
    %c0_43 = arith.constant 0 : index
    %129 = vector.load %arg13[%c0_42, %c0_43] : memref<128x128xbf16, #tpu.memory_space<vmem>>, vector<128x128xbf16>
    %cst_44 = arith.constant dense<0.000000e+00> : vector<8x128xf32>
    %130 = tpu.matmul %128, %129, %cst_44 {dimension_numbers = #tpu.dot_dimension_numbers<[1], [0], [0], [1], [0, 0, 1, 1], [], []>} : vector<8x128xbf16>, vector<128x128xbf16>, vector<8x128xf32> -> vector<8x128xf32>
    %c0_45 = arith.constant 0 : index
    %c0_46 = arith.constant 0 : index
    %131 = vector.load %arg14[%c0_45, %c0_46] : memref<1x128xf32, #tpu.memory_space<vmem>>, vector<1x128xf32>
    %132 = vector.broadcast %131 : vector<1x128xf32> to vector<8x128xf32>
    %133 = arith.addf %130, %132 : vector<8x128xf32>
    %134 = arith.negf %133 : vector<8x128xf32>
    %135 = math.exp %134 : vector<8x128xf32>
    %cst_47 = arith.constant 1.000000e+00 : f32
    %136 = vector.broadcast %cst_47 : f32 to vector<8x128xf32>
    %137 = arith.addf %136, %135 : vector<8x128xf32>
    %138 = arith.divf %136, %137 : vector<8x128xf32>
    %139 = vector.extract_strided_slice %138 {offsets = [0, 0], sizes = [8, 1], strides = [1, 1]} : vector<8x128xf32> to vector<8x1xf32>
    %c0_48 = arith.constant 0 : index
    %c0_49 = arith.constant 0 : index
    %140 = vector.load %arg15[%c0_48, %c0_49] : memref<8x1xf32, #tpu.memory_space<vmem>>, vector<8x1xf32>
    tpu.vector_store %arg15[%c0_48, %c0_49], %139 {strides = array<i32>} : memref<8x1xf32, #tpu.memory_space<vmem>>, vector<8x1xf32>,
    return
  }
  func.func @transform_0(%arg0: i32) -> (i32, i32) {
    %c0_i32 = arith.constant 0 : i32
    %c0_i32_0 = arith.constant 0 : i32
    return %arg0, %c0_i32 : i32, i32
  }
  func.func @transform_1(%arg0: i32) -> (i32, i32) {
    %c0_i32 = arith.constant 0 : i32
    %c0_i32_0 = arith.constant 0 : i32
    return %arg0, %c0_i32 : i32, i32
  }
  func.func @transform_2(%arg0: i32) -> (i32, i32) {
    %c0_i32 = arith.constant 0 : i32
    %c0_i32_0 = arith.constant 0 : i32
    %c0_i32_1 = arith.constant 0 : i32
    return %c0_i32, %c0_i32_0 : i32, i32
  }
  func.func @transform_3(%arg0: i32) -> (i32, i32) {
    %c0_i32 = arith.constant 0 : i32
    %c0_i32_0 = arith.constant 0 : i32
    %c0_i32_1 = arith.constant 0 : i32
    return %c0_i32, %c0_i32_0 : i32, i32
  }
  func.func @transform_4(%arg0: i32) -> (i32, i32) {
    %c0_i32 = arith.constant 0 : i32
    %c0_i32_0 = arith.constant 0 : i32
    %c0_i32_1 = arith.constant 0 : i32
    return %c0_i32, %c0_i32_0 : i32, i32
  }
  func.func @transform_5(%arg0: i32) -> (i32, i32) {
    %c0_i32 = arith.constant 0 : i32
    %c0_i32_0 = arith.constant 0 : i32
    %c0_i32_1 = arith.constant 0 : i32
    return %c0_i32, %c0_i32_0 : i32, i32
  }
  func.func @transform_6(%arg0: i32) -> (i32, i32) {
    %c0_i32 = arith.constant 0 : i32
    %c0_i32_0 = arith.constant 0 : i32
    %c0_i32_1 = arith.constant 0 : i32
    return %c0_i32, %c0_i32_0 : i32, i32
  }
  func.func @transform_7(%arg0: i32) -> (i32, i32) {
    %c0_i32 = arith.constant 0 : i32
    %c0_i32_0 = arith.constant 0 : i32
    %c0_i32_1 = arith.constant 0 : i32
    return %c0_i32, %c0_i32_0 : i32, i32
  }
  func.func @transform_8(%arg0: i32) -> (i32, i32) {
    %c0_i32 = arith.constant 0 : i32
    %c0_i32_0 = arith.constant 0 : i32
    %c0_i32_1 = arith.constant 0 : i32
    return %c0_i32, %c0_i32_0 : i32, i32
  }
  func.func @transform_9(%arg0: i32) -> (i32, i32) {
    %c0_i32 = arith.constant 0 : i32
    %c0_i32_0 = arith.constant 0 : i32
    %c0_i32_1 = arith.constant 0 : i32
    return %c0_i32, %c0_i32_0 : i32, i32
  }
  func.func @transform_10(%arg0: i32) -> (i32, i32) {
    %c0_i32 = arith.constant 0 : i32
    %c0_i32_0 = arith.constant 0 : i32
    %c0_i32_1 = arith.constant 0 : i32
    return %c0_i32, %c0_i32_0 : i32, i32
  }
  func.func @transform_11(%arg0: i32) -> (i32, i32) {
    %c0_i32 = arith.constant 0 : i32
    %c0_i32_0 = arith.constant 0 : i32
    %c0_i32_1 = arith.constant 0 : i32
    return %c0_i32, %c0_i32_0 : i32, i32
  }
  func.func @transform_12(%arg0: i32) -> (i32, i32) {
    %c0_i32 = arith.constant 0 : i32
    %c0_i32_0 = arith.constant 0 : i32
    %c0_i32_1 = arith.constant 0 : i32
    return %c0_i32, %c0_i32_0 : i32, i32
  }
  func.func @transform_13(%arg0: i32) -> (i32, i32) {
    %c0_i32 = arith.constant 0 : i32
    %c0_i32_0 = arith.constant 0 : i32
    %c0_i32_1 = arith.constant 0 : i32
    return %c0_i32, %c0_i32_0 : i32, i32
  }
  func.func @transform_14(%arg0: i32) -> (i32, i32) {
    %c0_i32 = arith.constant 0 : i32
    %c0_i32_0 = arith.constant 0 : i32
    return %arg0, %c0_i32 : i32, i32
  }
}

</mosaic_0001>

<bundles_post_ra>
// kernel: tpu_custom_call.1
= control target key start
LH: loop header
LB: loop body
LE: loop exit
PB: predicated region body
PF: predicated region fallthrough
CT: control target
= control target key end

     0   :  { %19 = vsyncpa [#allocation3], 0  ;;  %s1788_s0 = inlined_call_operand.hbm [shape: f32[8,13], index: 0, kind: input, shape index: {}]   ;;  %s1789_s1 = inlined_call_operand.hbm [shape: s32[8,12], index: 1, kind: input, shape index: {}]   ;;  %s1790_s2 = inlined_call_operand.hbm [shape: bf16[128,128], index: 2, kind: input, shape index: {}]   ;;  %s1791_s3 = inlined_call_operand.hbm [shape: bf16[128,128], index: 3, kind: input, shape index: {}]   ;;  %s1792_s4 = inlined_call_operand.hbm [shape: bf16[128,128], index: 4, kind: input, shape index: {}]   ;;  %s1793_s5 = inlined_call_operand.hbm [shape: bf16[128,128], index: 5, kind: input, shape index: {}]   ;;  %s1794_s6 = inlined_call_operand.vmem [shape: f32[1,128], index: 6, kind: input, shape index: {}]   ;;  %s1795_s7 = inlined_call_operand.hbm [shape: bf16[128,128], index: 7, kind: input, shape index: {}]   ;;  %s1796_s8 = inlined_call_operand.vmem [shape: f32[1,128], index: 8, kind: input, shape index: {}]   ;;  %s1797_s9 = inlined_call_operand.hbm [shape: bf16[128,128], index: 9, kind: input, shape index: {}]   ;;  %s1798_s10 = inlined_call_operand.hbm [shape: bf16[128,128], index: 10, kind: input, shape index: {}]   ;;  %s1799_s11 = inlined_call_operand.vmem [shape: f32[1,128], index: 11, kind: input, shape index: {}]   ;;  %s1800_s12 = inlined_call_operand.hbm [shape: bf16[128,128], index: 12, kind: input, shape index: {}]   ;;  %s1801_s13 = inlined_call_operand.vmem [shape: f32[1,128], index: 13, kind: input, shape index: {}]   ;;  %s1802_s14 = inlined_call_operand.vmem [shape: f32[8,1], index: 14, kind: output, shape index: {}]  }
   0x1   :  { %20 = vsyncpa [#allocation5], 0 }
   0x2   :  { %21 = vsyncpa [#allocation8], 0 }
   0x3   :  { %22 = vsyncpa [#allocation11], 0 }
   0x4   :  { %23 = vsyncpa [#allocation14], 0  ;;  %s41_s15 = sshll.u32 %s1789_s1, 4  ;;  %s42_s15 = int_to_ptr.hbm [resolvable:$true] %s41_s15 }
   0x5   :  { %24 = vsyncpa [#allocation17], 0  ;;  %s1605_s16 = smov [#allocation4]   ;;  %s64_s20 = sshll.u32 %s1791_s3, 4  ;;  %s65_s20 = int_to_ptr.hbm [resolvable:$true] %s64_s20 }
   0x6   :  { %s43_s17 = sshll.u32 %s1605_s16, 4  ;;  %s1606_s21 = smov [#allocation7]   ;;  %s44_s17 = int_to_ptr.vmem [resolvable:$true] %s43_s17 }
   0x7   :  { %46 = dma.hbm_to_vmem [thread:$0]  %s42_s15, 128, %s44_s17, [#allocation5]  }
   0x8   :  { %s66_s22 = sshll.u32 %s1606_s21, 4  ;;  %s90_s25 = sshll.u32 %s1793_s5, 4  ;;  %s67_s22 = int_to_ptr.vmem [resolvable:$true] %s66_s22  ;;  %s91_s25 = int_to_ptr.hbm [resolvable:$true] %s90_s25 }
   0x9   :  { %s1607_s1 = smov 64   ;;  %s1608_s26 = smov 4  }
   0xa   :  { %72 = dma.hbm_to_vmem [thread:$0]  %s65_s20, 1024, %s67_s22, [#allocation8], %s1607_s1, %s1607_s1, %s1608_s26  }
   0xb   :  { %s120_s29 = sshll.u32 %s1797_s9, 4  ;;  %s1609_s3 = smov [#allocation10]   ;;  %s121_s29 = int_to_ptr.hbm [resolvable:$true] %s120_s29 }
   0xc   :  { %s92_s30 = sshll.u32 %s1609_s3, 4  ;;  %s1610_s5 = smov [#allocation13]   ;;  %s93_s30 = int_to_ptr.vmem [resolvable:$true] %s92_s30 }
   0xd   :  { %98 = dma.hbm_to_vmem [thread:$0]  %s91_s25, 1024, %s93_s30, [#allocation11], %s1607_s1, %s1607_s1, %s1608_s26  }
   0xe   :  { %s122_s15 = sshll.u32 %s1610_s5, 4  ;;  %s30_s18 = sshll.u32 %s1788_s0, 4  ;;  %s123_s15 = int_to_ptr.vmem [resolvable:$true] %s122_s15  ;;  %s31_s18 = int_to_ptr.hbm [resolvable:$true] %s30_s18 }
   0xf   :  { %128 = dma.hbm_to_vmem [thread:$0]  %s121_s29, 1024, %s123_s15, [#allocation14], %s1607_s1, %s1607_s1, %s1608_s26  }
  0x10   :  { %s51_s20 = sshll.u32 %s1790_s2, 4  ;;  %s1611_s21 = smov [#allocation2]   ;;  %s52_s20 = int_to_ptr.hbm [resolvable:$true] %s51_s20 }
  0x11   :  { %s32_s22 = sshll.u32 %s1611_s21, 4  ;;  %s1612_s23 = smov [#allocation6]   ;;  %s33_s22 = int_to_ptr.vmem [resolvable:$true] %s32_s22 }
  0x12   :  { %35 = dma.hbm_to_vmem [thread:$0]  %s31_s18, 128, %s33_s22, [#allocation3]  }
  0x13   :  { %s53_s24 = sshll.u32 %s1612_s23, 4  ;;  %s77_s0 = sshll.u32 %s1792_s4, 4  ;;  %s54_s24 = int_to_ptr.vmem [resolvable:$true] %s53_s24  ;;  %s78_s0 = int_to_ptr.hbm [resolvable:$true] %s77_s0 }
  0x14   :  { %59 = dma.hbm_to_vmem [thread:$0]  %s52_s20, 1024, %s54_s24, [#allocation5], %s1607_s1, %s1607_s1, %s1608_s26  }
  0x15   :  { %s105_s2 = sshll.u32 %s1795_s7, 4  ;;  %s1613_s3 = smov [#allocation9]   ;;  %s106_s2 = int_to_ptr.hbm [resolvable:$true] %s105_s2 }
  0x16   :  { %s79_s30 = sshll.u32 %s1613_s3, 4  ;;  %s1614_s5 = smov [#allocation12]   ;;  %s80_s30 = int_to_ptr.vmem [resolvable:$true] %s79_s30 }
  0x17   :  { %85 = dma.hbm_to_vmem [thread:$0]  %s78_s0, 1024, %s80_s30, [#allocation8], %s1607_s1, %s1607_s1, %s1608_s26  }
  0x18   :  { %s107_s4 = sshll.u32 %s1614_s5, 4  ;;  %s133_s17 = sshll.u32 %s1798_s10, 4  ;;  %s108_s4 = int_to_ptr.vmem [resolvable:$true] %s107_s4  ;;  %s134_s17 = int_to_ptr.hbm [resolvable:$true] %s133_s17 }
  0x19   :  { %113 = dma.hbm_to_vmem [thread:$0]  %s106_s2, 1024, %s108_s4, [#allocation11], %s1607_s1, %s1607_s1, %s1608_s26  }
  0x1a   :  { %s148_s9 = sshll.u32 %s1800_s12, 4  ;;  %s1615_s19 = smov [#allocation15]   ;;  %s149_s9 = int_to_ptr.hbm [resolvable:$true] %s148_s9 }
  0x1b   :  { %s135_s20 = sshll.u32 %s1615_s19, 4  ;;  %s1616_s21 = smov [#allocation16]   ;;  %s136_s20 = int_to_ptr.vmem [resolvable:$true] %s135_s20 }
  0x1c   :  { %141 = dma.hbm_to_vmem [thread:$0]  %s134_s17, 1024, %s136_s20, [#allocation14], %s1607_s1, %s1607_s1, %s1608_s26  }
  0x1d   :  { %s150_s10 = sshll.u32 %s1616_s21, 4  ;;  %s151_s10 = int_to_ptr.vmem [resolvable:$true] %s150_s10 }
  0x1e   :  { %156 = dma.hbm_to_vmem [thread:$0]  %s149_s9, 1024, %s151_s10, [#allocation17], %s1607_s1, %s1607_s1, %s1608_s26  }
  0x1f   :  { %1593 = dma.done.wait [#allocation3], 128  }
  0x20   :  { %1594 = vsyncadd [#allocation3], 4294967168 }
  0x21   :  { %1595 = dma.done.wait [#allocation5], 1152  }
  0x22   :  { %1596 = vsyncadd [#allocation5], 4294966144 }
  0x23   :  { %1597 = dma.done.wait [#allocation8], 2048  }
  0x24   :  { %1598 = vsyncadd [#allocation8], 4294965248 }
  0x25   :  { %1599 = dma.done.wait [#allocation11], 2048  }
  0x26   :  { %1600 = vsyncadd [#allocation11], 4294965248 }
  0x27   :  { %1601 = dma.done.wait [#allocation14], 2048  }
  0x28   :  { %1602 = vsyncadd [#allocation14], 4294965248 }
  0x29   :  { %1603 = dma.done.wait [#allocation17], 1024  }
  0x2a   :  { %1604 = vsyncadd [#allocation17], 4294966272  ;;  %v1617_v0 = vmov 4   ;;  %v1618_v1 = vmov 0   ;;  %v1619_v2 = vmov 2   ;;  %v369_v3 = vld [vmem:[#allocation4] sm:$0xff]  ;;  %v386_v50 = vlaneseq }
  0x2b   :  { %1334 = vset.pattern.permute.xlu1 %v1617_v0  ;;  %1332 = vset.pattern.permute.xlu0 %v1618_v1  ;;  %v1251_v4 = vld [vmem:[#allocation10 + $0x38] sm:$0xff]  ;;  %v1250_v5 = vld [vmem:[#allocation10 + $0x30] sm:$0xff]  ;;  %v1249_v8 = vld [vmem:[#allocation10 + $0x28] sm:$0xff]  ;;  %v1620_v10 = vmov 5   ;;  %v1621_v11 = vmov 1   ;;  %v1622_v13 = vmov 6  }
  0x2c   :  { %1336 = vset.pattern.permute.xlu2 %v1619_v2  ;;  %491 = vperm.xlu1 %1334, %v369_v3   ;;  %v1275_v6 = vld [vmem:[#allocation7 + $0x38] sm:$0xff]  ;;  %v1274_v9 = vld [vmem:[#allocation7 + $0x30] sm:$0xff]  ;;  %v1248_v12 = vld [vmem:[#allocation10 + $0x20] sm:$0xff]  ;;  %v1623_v15 = vmov 3   ;;  %v1624_v17 = vmov 8   ;;  %v1625_v18 = vmov 7  }
  0x2d   :  { %389 = vperm.xlu0 %1332, %v369_v3   ;;  %271 = vmatpush.bf16.msra.mxu0 %v1251_v4  ;;  %v1267_v7 = vld [vmem:[#allocation6 + $0x38] sm:$0xff]  ;;  %v1246_v16 = vld [vmem:[#allocation10 + $0x10] sm:$0xff]  ;;  %v1245_v19 = vld [vmem:[#allocation10 + $0x8] sm:$0xff]  ;;  %v1626_v22 = vmov 9   ;;  %vm200_vm0 = vcmask 105472   ;;  %v1627_v23 = vmov 11  }
  0x2e   :  { %400 = vperm.xlu2 %1336, %v369_v3   ;;  %563 = vmatpush.bf16.msra.mxu3 %v1275_v6  ;;  %v1247_v14 = vld [vmem:[#allocation10 + $0x18] sm:$0xff]  ;;  %v1244_v20 = vld [vmem:[#allocation10] sm:$0xff]  ;;  %v199_v21 = vld [vmem:[#allocation2] sm:$0xff]  ;;  %v1628_v25 = vmov 10   ;;  %v387_v55 = vand.u32 127, %v386_v50  ;;  %vm696_vm14 = vcmask 7168  }
  0x2f   :  { %461 = vmatpush.bf16.msra.mxu2 %v1267_v7  ;;  %v1014_v24 = vpack.c.bf16 %v199_v21, %v199_v21  ;;  %vm1013_vm1 = vmpackc.low %vm200_vm0, %vm200_vm0  ;;  %v1273_v26 = vld [vmem:[#allocation7 + $0x28] sm:$0xff]  ;;  %v1266_v27 = vld [vmem:[#allocation6 + $0x30] sm:$0xff]  ;;  %vm698_vm15 = vcmask 15360   ;;  %vm700_vm0 = vcmask 23552  }
  0x30   :  { %v1272_v28 = vld [vmem:[#allocation7 + $0x20] sm:$0xff]  ;;  %v1265_v29 = vld [vmem:[#allocation6 + $0x28] sm:$0xff]  ;;  %v1271_v30 = vld [vmem:[#allocation7 + $0x18] sm:$0xff] }
  0x31   :  { %272 = vmatpush.bf16.msra.mxu0 %v1250_v5  ;;  %v1264_v31 = vld [vmem:[#allocation6 + $0x20] sm:$0xff]  ;;  %v1270_v32 = vld [vmem:[#allocation7 + $0x10] sm:$0xff]  ;;  %v1263_v33 = vld [vmem:[#allocation6 + $0x18] sm:$0xff] }
  0x32   :  { %564 = vmatpush.bf16.msra.mxu3 %v1274_v9  ;;  %v1283_v34 = vld [vmem:[#allocation9 + $0x38] sm:$0xff]  ;;  %v1269_v35 = vld [vmem:[#allocation7 + $0x8] sm:$0xff]  ;;  %v1262_v36 = vld [vmem:[#allocation6 + $0x10] sm:$0xff] }
  0x33   :  { %462 = vmatpush.bf16.msra.mxu2 %v1266_v27  ;;  %v1282_v37 = vld [vmem:[#allocation9 + $0x30] sm:$0xff]  ;;  %v1259_v38 = vld [vmem:[#allocation12 + $0x38] sm:$0xff]  ;;  %v1268_v39 = vld [vmem:[#allocation7] sm:$0xff] }
  0x34   :  { %1335 = vset.pattern.permute.xlu1 %v1620_v10  ;;  %v1261_v40 = vld [vmem:[#allocation6 + $0x8] sm:$0xff]  ;;  %354 = vmatpush.bf16.msra.mxu1 %v1259_v38  ;;  %v1258_v43 = vld [vmem:[#allocation12 + $0x30] sm:$0xff]  ;;  %v1260_v44 = vld [vmem:[#allocation6] sm:$0xff] }
  0x35   :  { %1333 = vset.pattern.permute.xlu0 %v1621_v11  ;;  %496 = vperm.xlu1 %1335, %v369_v3   ;;  %v1281_v42 = vld [vmem:[#allocation9 + $0x28] sm:$0xff]  ;;  %v1280_v45 = vld [vmem:[#allocation9 + $0x20] sm:$0xff]  ;;  %v1279_v47 = vld [vmem:[#allocation9 + $0x18] sm:$0xff] }
  0x36   :  { %273 = vmatpush.bf16.msra.mxu0 %v1249_v8  ;;  %394 = vperm.xlu0 %1333, %v369_v3   ;;  %v1257_v46 = vld [vmem:[#allocation12 + $0x28] sm:$0xff]  ;;  %v1256_v49 = vld [vmem:[#allocation12 + $0x20] sm:$0xff]  ;;  %v1278_v53 = vld [vmem:[#allocation9 + $0x10] sm:$0xff] }
  0x37   :  { %1337 = vset.pattern.permute.xlu2 %v1622_v13  ;;  %565 = vmatpush.bf16.msra.mxu3 %v1273_v26  ;;  %v1255_v54 = vld [vmem:[#allocation12 + $0x18] sm:$0xff]  ;;  %v1277_v56 = vld [vmem:[#allocation9 + $0x8] sm:$0xff]  ;;  %v1254_v57 = vld [vmem:[#allocation12 + $0x10] sm:$0xff] }
  0x38   :  { %502 = vperm.xlu2 %1337, %v369_v3   ;;  %463 = vmatpush.bf16.msra.mxu2 %v1265_v29  ;;  %v1276_v59 = vld [vmem:[#allocation9] sm:$0xff]  ;;  %v1253_v62 = vld [vmem:[#allocation12 + $0x8] sm:$0xff] }
  0x39   :  { %355 = vmatpush.bf16.msra.mxu1 %v1258_v43  ;;  %v1252_v8 = vld [vmem:[#allocation12] sm:$0xff]  ;;  %v1286_v43 = vld [vmem:[#allocation13 + $0x10] sm:$0xff] }
  0x3a   :  { %274 = vmatpush.bf16.msra.mxu0 %v1248_v12 }
  0x3b   :  { %566 = vmatpush.bf16.msra.mxu3 %v1272_v28 }
  0x3c   :  { %464 = vmatpush.bf16.msra.mxu2 %v1264_v31 }
  0x3d   :  { %1338 = vset.pattern.permute.xlu1 %v1623_v15  ;;  %356 = vmatpush.bf16.msra.mxu1 %v1257_v46  ;;  %v1291_v15 = vld [vmem:[#allocation13 + $0x38] sm:$0xff] }
  0x3e   :  { %275 = vmatpush.bf16.msra.mxu0 %v1247_v14  ;;  %406 = vperm.xlu1 %1338, %v369_v3  }
  0x3f   :  { %1340 = vset.pattern.permute.xlu0 %v1624_v17  ;;  %567 = vmatpush.bf16.msra.mxu3 %v1271_v30 }
  0x40   :  { %593 = vperm.xlu0 %1340, %v369_v3   ;;  %1339 = vset.pattern.permute.xlu2 %v1625_v18 }
  0x41   :  { %508 = vperm.xlu2 %1339, %v369_v3   ;;  %465 = vmatpush.bf16.msra.mxu2 %v1263_v33 }
  0x42   :  { %276 = vmatpush.bf16.msra.mxu0 %v1246_v16  ;;  %357 = vmatpush.bf16.msra.mxu1 %v1256_v49 }
  0x43   :  { %568 = vmatpush.bf16.msra.mxu3 %v1270_v32  ;;  %v1345_v32 = vld [vmem:[%s1794_s6] ss:$0 sm:$0xff] }
  0x45   :  { %466 = vmatpush.bf16.msra.mxu2 %v1262_v36 }
  0x46   :  { %277 = vmatpush.bf16.msra.mxu0 %v1245_v19  ;;  %1341 = vset.pattern.permute.xlu1 %v1626_v22 }
  0x47   :  { %598 = vperm.xlu1 %1341, %v369_v3   ;;  %569 = vmatpush.bf16.msra.mxu3 %v1269_v35 }
  0x48   :  { %1344 = vset.pattern.permute.xlu0 %v1627_v23  ;;  %358 = vmatpush.bf16.msra.mxu1 %v1255_v54 }
  0x49   :  { %1342 = vset.pattern.permute.xlu2 %v1628_v25  ;;  %467 = vmatpush.bf16.msra.mxu2 %v1261_v40  ;;  %v1290_v40 = vld [vmem:[#allocation13 + $0x30] sm:$0xff] }
  0x4a   :  { %278 = vmatpush.bf16.msra.mxu0 %v1244_v20  ;;  %604 = vperm.xlu2 %1342, %v369_v3  }
  0x4b   :  { %570 = vmatpush.bf16.msra.mxu3 %v1268_v39 }
  0x4c   :  { %359 = vmatpush.bf16.msra.mxu1 %v1254_v57 }
  0x4d   :  { %1015 = vmatmul.msk.bf16.vlgmr.msra.gmra.mxu0 %vm1013_vm1, %v1014_v24  ;;  %468 = vmatpush.bf16.msra.mxu2 %v1260_v44  ;;  %v1285_v44 = vld [vmem:[#allocation13 + $0x8] sm:$0xff]  ;;  %vm702_vm1 = vcmask 31744  }
  0x4e   :  { %665 = vmatpush.bf16.msrb.mxu0 %v1283_v34 }
  0x4f   :  { %1343 = vset.pattern.permute.xlu1 %v1627_v23 }
  0x50   :  { %610 = vperm.xlu1 %1343, %v369_v3   ;;  %360 = vmatpush.bf16.msra.mxu1 %v1253_v62 }
  0x51   :  { %850 = vmatpush.bf16.msrb.mxu2 %v1291_v15  ;;  %v1303_v15 = vld [vmem:[#allocation16 + $0x18] sm:$0xff] }
  0x52   :  { %666 = vmatpush.bf16.msrb.mxu0 %v1282_v37 }
  0x54   :  { %361 = vmatpush.bf16.msra.mxu1 %v1252_v8  ;;  %v1292_v8 = vld [vmem:[#allocation15] sm:$0xff] }
  0x55   :  { %851 = vmatpush.bf16.msrb.mxu2 %v1290_v40 }
  0x56   :  { %667 = vmatpush.bf16.msrb.mxu0 %v1281_v42  ;;  %v1288_v42 = vld [vmem:[#allocation13 + $0x20] sm:$0xff] }
  0x5a   :  { %668 = vmatpush.bf16.msrb.mxu0 %v1280_v45  ;;  %v1284_v45 = vld [vmem:[#allocation13] sm:$0xff] }
  0x5e   :  { %669 = vmatpush.bf16.msrb.mxu0 %v1279_v47 }
  0x62   :  { %670 = vmatpush.bf16.msrb.mxu0 %v1278_v53 }
  0x66   :  { %671 = vmatpush.bf16.msrb.mxu0 %v1277_v56 }
  0x6a   :  { %672 = vmatpush.bf16.msrb.mxu0 %v1276_v59 }
  0x88   :  { %v401_v41 = vpop.permute.xlu2 %400 }
  0x89   :  { %vm402_vm7 = vcmp.eq.s32.totalorder %v387_v55, %v401_v41  ;;  %v1289_v41 = vld [vmem:[#allocation13 + $0x28] sm:$0xff] }
  0x8a   :  { %v403_v9 = vsel %vm402_vm7, 1, %v1618_v1  ;;  %852 = vmatpush.bf16.msrb.mxu2 %v1289_v41 }
  0x8e   :  { %853 = vmatpush.bf16.msrb.mxu2 %v1288_v42 }
  0x92   :  { %v503_v48 = vpop.permute.xlu2 %502 }
  0x93   :  { %vm504_vm4 = vcmp.eq.s32.totalorder %v387_v55, %v503_v48 }
  0x94   :  { %v505_v2 = vsel %vm504_vm4, 1, %v1618_v1 }
  0x9b   :  { %v509_v58 = vpop.permute.xlu2 %508 }
  0x9c   :  { %vm510_vm6 = vcmp.eq.s32.totalorder %v387_v55, %v509_v58 }
  0x9d   :  { %v511_v6 = vsel %vm510_vm6, 1, %v1618_v1 }
  0x9e   :  { %v492_v51 = vpop.permute.xlu1 %491 }
  0x9f   :  { %v390_v52 = vpop.permute.xlu0 %389  ;;  %vm493_vm2 = vcmp.eq.s32.totalorder %v387_v55, %v492_v51 }
  0xa0   :  { %vm391_vm3 = vcmp.eq.s32.totalorder %v387_v55, %v390_v52  ;;  %v494_v60 = vsel %vm493_vm2, 1, %v1618_v1  ;;  %v1346_v52 = vld [vmem:[%s1796_s8] ss:$0 sm:$0xff]  ;;  %vm704_vm2 = vcmask 39936  }
  0xa1   :  { %v392_v63 = vsel %vm391_vm3, 1, %v1618_v1  ;;  %vm706_vm3 = vcmask 48128  }
  0xa2   :  { %vm1176_vm4 = vmpackc.low %vm706_vm3, %vm706_vm3 }
  0xa4   :  { %v605_v22 = vpop.permute.xlu2 %604 }
  0xa5   :  { %vm606_vm12 = vcmp.eq.s32.totalorder %v387_v55, %v605_v22 }
  0xa6   :  { %v607_v27 = vsel %vm606_vm12, 1, %v1618_v1 }
  0xa7   :  { %v497_v61 = vpop.permute.xlu1 %496 }
  0xa8   :  { %vm498_vm5 = vcmp.eq.s32.totalorder %v387_v55, %v497_v61  ;;  %v395_v0 = vpop.permute.xlu0 %394 }
  0xa9   :  { %v499_v3 = vsel %vm498_vm5, 1, %v1618_v1  ;;  %vm396_vm8 = vcmp.eq.s32.totalorder %v387_v55, %v395_v0  ;;  %v1299_v0 = vld [vmem:[#allocation15 + $0x38] sm:$0xff] }
  0xaa   :  { %v500_v4 = vadd.s32 %v499_v3, %v494_v60  ;;  %v397_v5 = vsel %vm396_vm8, 1, %v1618_v1  ;;  %789 = vmatpush.bf16.msrb.mxu1 %v1299_v0  ;;  %v1297_v3 = vld [vmem:[#allocation15 + $0x28] sm:$0xff] }
  0xab   :  { %v398_v7 = vadd.s32 %v397_v5, %v392_v63  ;;  %v1295_v5 = vld [vmem:[#allocation15 + $0x18] sm:$0xff] }
  0xac   :  { %v506_v10 = vadd.s32 %v505_v2, %v500_v4  ;;  %v1298_v2 = vld [vmem:[#allocation15 + $0x30] sm:$0xff]  ;;  %v1296_v4 = vld [vmem:[#allocation15 + $0x20] sm:$0xff] }
  0xad   :  { %v404_v12 = vadd.s32 %v403_v9, %v398_v7  ;;  %v1293_v7 = vld [vmem:[#allocation15 + $0x8] sm:$0xff]  ;;  %v1307_v9 = vld [vmem:[#allocation16 + $0x38] sm:$0xff] }
  0xae   :  { %v512_v11 = vadd.s32 %v511_v6, %v506_v10  ;;  %790 = vmatpush.bf16.msrb.mxu1 %v1298_v2  ;;  %v1294_v6 = vld [vmem:[#allocation15 + $0x10] sm:$0xff]  ;;  %938 = vmatpush.bf16.msrb.mxu3 %v1307_v9 }
  0xaf   :  { %v1306_v10 = vld [vmem:[#allocation16 + $0x30] sm:$0xff] }
  0xb0   :  { %v407_v13 = vpop.permute.xlu1 %406  ;;  %v513_v14 = vcvt.s32.f32 %v512_v11  ;;  %v1305_v11 = vld [vmem:[#allocation16 + $0x28] sm:$0xff] }
  0xb1   :  { %vm408_vm9 = vcmp.eq.s32.totalorder %v387_v55, %v407_v13  ;;  %v1304_v13 = vld [vmem:[#allocation16 + $0x20] sm:$0xff] }
  0xb2   :  { %v409_v16 = vsel %vm408_vm9, 1, %v1618_v1  ;;  %v514_v17 = vpack.c.bf16 %v513_v14, %v513_v14  ;;  %v594_v19 = vpop.permute.xlu0 %593  ;;  %791 = vmatpush.bf16.msrb.mxu1 %v1297_v3  ;;  %939 = vmatpush.bf16.msrb.mxu3 %v1306_v10 }
  0xb3   :  { %v410_v18 = vadd.s32 %v409_v16, %v404_v12  ;;  %vm595_vm10 = vcmp.eq.s32.totalorder %v387_v55, %v594_v19 }
  0xb4   :  { %571 = vmatmul.bf16.vlgmr.msra.gmra.mxu3 %v514_v17  ;;  %v596_v24 = vsel %vm595_vm10, 1, %v1618_v1  ;;  %v1302_v17 = vld [vmem:[#allocation16 + $0x10] sm:$0xff] }
  0xb5   :  { %v411_v20 = vcvt.s32.f32 %v410_v18 }
  0xb6   :  { %792 = vmatpush.bf16.msrb.mxu1 %v1296_v4  ;;  %940 = vmatpush.bf16.msrb.mxu3 %v1305_v11 }
  0xb7   :  { %v412_v21 = vpack.c.bf16 %v411_v20, %v411_v20 }
  0xb9   :  { %v599_v23 = vpop.permute.xlu1 %598  ;;  %469 = vmatmul.bf16.vlgmr.msra.gmra.mxu2 %v412_v21 }
  0xba   :  { %vm600_vm11 = vcmp.eq.s32.totalorder %v387_v55, %v599_v23  ;;  %793 = vmatpush.bf16.msrb.mxu1 %v1295_v5  ;;  %941 = vmatpush.bf16.msrb.mxu3 %v1304_v13 }
  0xbb   :  { %v601_v25 = vsel %vm600_vm11, 1, %v1618_v1 }
  0xbc   :  { %v602_v26 = vadd.s32 %v601_v25, %v596_v24 }
  0xbe   :  { %v608_v28 = vadd.s32 %v607_v27, %v602_v26  ;;  %794 = vmatpush.bf16.msrb.mxu1 %v1294_v6  ;;  %942 = vmatpush.bf16.msrb.mxu3 %v1303_v15 }
  0xc2   :  { %v611_v29 = vpop.permute.xlu1 %610  ;;  %795 = vmatpush.bf16.msrb.mxu1 %v1293_v7  ;;  %943 = vmatpush.bf16.msrb.mxu3 %v1302_v17 }
  0xc3   :  { %vm612_vm13 = vcmp.eq.s32.totalorder %v387_v55, %v611_v29  ;;  %v1301_v29 = vld [vmem:[#allocation16 + $0x8] sm:$0xff] }
  0xc4   :  { %v613_v30 = vsel %vm612_vm13, 1, %v1618_v1  ;;  %v1287_v1 = vld [vmem:[#allocation13 + $0x18] sm:$0xff] }
  0xc5   :  { %v614_v31 = vadd.s32 %v613_v30, %v608_v28  ;;  %854 = vmatpush.bf16.msrb.mxu2 %v1287_v1  ;;  %v1300_v30 = vld [vmem:[#allocation16] sm:$0xff] }
  0xc6   :  { %796 = vmatpush.bf16.msrb.mxu1 %v1292_v8  ;;  %944 = vmatpush.bf16.msrb.mxu3 %v1301_v29 }
  0xc7   :  { %v615_v33 = vcvt.s32.f32 %v614_v31  ;;  %v1347_v31 = vld [vmem:[%s1799_s11] ss:$0 sm:$0xff] }
  0xc9   :  { %v616_v34 = vpack.c.bf16 %v615_v33, %v615_v33  ;;  %855 = vmatpush.bf16.msrb.mxu2 %v1286_v43 }
  0xca   :  { %v280_v35 = vpop.f32.mrf.mxu0  ;;  %945 = vmatpush.bf16.msrb.mxu3 %v1300_v30 }
  0xcb   :  { %v281_v36 = vadd.f32 %v1345_v32, %v280_v35  ;;  %673 = vmatmul.bf16.vlgmr.msrb.gmra.mxu0 %v616_v34 }
  0xcd   :  { %v284_v37 = vmax.f32 %v281_v36, 0.0  ;;  %856 = vmatpush.bf16.msrb.mxu2 %v1285_v44 }
  0xcf   :  { %v285_v38 = vpack.c.bf16 %v284_v37, %v284_v37 }
  0xd1   :  { %362 = vmatmul.bf16.vlgmr.msra.gmra.mxu1 %v285_v38  ;;  %857 = vmatpush.bf16.msrb.mxu2 %v1284_v45  ;;  %v1348_v38 = vld [vmem:[%s1801_s13] ss:$0 sm:$0xff] }
  0xd2   :  { %v282_v39 = vpop.f32.mrf.mxu0 }
 0x137   :  { %v572_v46 = vpop.f32.mrf.mxu3 }
 0x13c   :  { %v470_v47 = vpop.f32.mrf.mxu2 }
 0x13d   :  { %v684_v48 = vmul.f32 %v572_v46, %v470_v47 }
 0x13f   :  { %v574_v49 = vpop.f32.mrf.mxu3  ;;  %685 = vadd.xlane.f32.xlu1 %v684_v48 }
 0x144   :  { %v472_v50 = vpop.f32.mrf.mxu2 }
 0x148   :  { %v674_v51 = vpop.f32.mrf.mxu0 }
 0x149   :  { %v693_v61 = vmul.f32 %v674_v51, %v572_v46  ;;  %v690_v63 = vmul.f32 %v674_v51, %v470_v47 }
 0x14e   :  { %v363_v53 = vpop.f32.mrf.mxu1 }
 0x14f   :  { %v364_v54 = vadd.f32 %v1346_v52, %v363_v53 }
 0x150   :  { %v676_v56 = vpop.f32.mrf.mxu0 }
 0x151   :  { %v367_v55 = vmax.f32 %v364_v54, 0.0 }
 0x153   :  { %v681_v57 = vmul.f32 %v572_v46, %v367_v55  ;;  %v678_v58 = vmul.f32 %v470_v47, %v367_v55  ;;  %v368_v59 = vpack.c.bf16 %v367_v55, %v367_v55  ;;  %v687_v62 = vmul.f32 %v674_v51, %v367_v55 }
 0x155   :  { %682 = vadd.xlane.f32.xlu0 %v681_v57  ;;  %679 = vadd.xlane.f32.xlu2 %v678_v58 }
 0x156   :  { %858 = vmatmul.bf16.vlgmr.msrb.gmra.mxu2 %v368_v59  ;;  %v365_v60 = vpop.f32.mrf.mxu1 }
 0x15d   :  { %694 = vadd.xlane.f32.xlu0 %v693_v61  ;;  %688 = vadd.xlane.f32.xlu2 %v687_v62 }
 0x165   :  { %691 = vadd.xlane.f32.xlu2 %v690_v63 }
 0x1b2   :  { %v686_v19 = vpop.xlane.xlu1 %685 }
 0x1c8   :  { %v680_v12 = vpop.xlane.xlu2 %679  ;;  %v683_v14 = vpop.xlane.xlu0 %682 }
 0x1c9   :  { %v697_v18 = vsel %vm696_vm14, %v680_v12, %v683_v14 }
 0x1ca   :  { %v699_v20 = vsel %vm698_vm15, %v697_v18, %v686_v19 }
 0x1d0   :  { %v689_v16 = vpop.xlane.xlu2 %688  ;;  %v695_v23 = vpop.xlane.xlu0 %694 }
 0x1d1   :  { %v701_v21 = vsel %vm700_vm0, %v699_v20, %v689_v16 }
 0x1d8   :  { %v692_v22 = vpop.xlane.xlu2 %691 }
 0x1d9   :  { %v703_v24 = vsel %vm702_vm1, %v701_v21, %v692_v22  ;;  %v859_v25 = vpop.f32.mrf.mxu2 }
 0x1da   :  { %v705_v26 = vsel %vm704_vm2, %v703_v24, %v695_v23 }
 0x1db   :  { %v1177_v27 = vpack.c.bf16 %v705_v26, %v705_v26 }
 0x1dd   :  { %1178 = vmatmul.msk.bf16.vlgmr.msrb.gmra.mxu1 %vm1176_vm4, %v1177_v27 }
 0x1e1   :  { %v861_v28 = vpop.f32.mrf.mxu2 }
 0x25a   :  { %v798_v32 = vpop.f32.mrf.mxu1 }
 0x25b   :  { %v860_v33 = vadd.f32 %v859_v25, %v798_v32 }
 0x25d   :  { %v867_v34 = vadd.f32 %v1347_v31, %v860_v33 }
 0x25f   :  { %v868_v35 = vmax.f32 %v867_v34, 0.0 }
 0x261   :  { %v869_v36 = vpack.c.bf16 %v868_v35, %v868_v35 }
 0x262   :  { %v800_v37 = vpop.f32.mrf.mxu1 }
 0x263   :  { %946 = vmatmul.bf16.vlgmr.msrb.gmra.mxu3 %v869_v36 }
 0x2e6   :  { %v947_v39 = vpop.f32.mrf.mxu3 }
 0x2e7   :  { %v948_v40 = vadd.f32 %v1348_v38, %v947_v39 }
 0x2e9   :  { %v1243_v41 = vmul.f32 -1.442695, %v948_v40 }
 0x2eb   :  { %1349 = vpow2.f32 %v1243_v41 }
 0x2ee   :  { %v949_v42 = vpop.f32.mrf.mxu3 }
 0x2f1   :  { %v1350_v1 = vpop.eup %1349 }
 0x2f2   :  { %v954_v43 = vadd.f32 1.0, %v1350_v1 }
 0x2f4   :  { %1351 = vrcp.f32 %v954_v43  ;;  %v966_v47 = vand.u32 2147483648, %v954_v43  ;;  %v964_v49 = vand.u32 2147483647, %v954_v43  ;;  %vm960_vm6 = vweird.f32 %v954_v43 }
 0x2f6   :  { %v967_v51 = vor.u32 1.1754944e-38, %v966_v47  ;;  %vm965_vm8 = vcmp.eq.f32.partialorder %v964_v49, 8.507059e+37 }
 0x2fa   :  { %v1352_v44 = vpop.eup %1351 }
 0x2fb   :  { %v956_v45 = vmul.f32 %v1352_v44, %v954_v43  ;;  %vm961_vm5 = vweird.f32 %v1352_v44 }
 0x2fc   :  { %vm962_vm7 = vmor %vm960_vm6, %vm961_vm5 }
 0x2fd   :  { %v957_v46 = vsub.f32 1.0, %v956_v45 }
 0x2ff   :  { %v958_v48 = vmul.f32 %v1352_v44, %v957_v46 }
 0x301   :  { %v959_v50 = vadd.f32 %v1352_v44, %v958_v48 }
 0x303   :  { %v963_v52 = vsel %vm962_vm7, %v1352_v44, %v959_v50 }
 0x304   :  { %v968_v53 = vsel %vm965_vm8, %v967_v51, %v963_v52 }
 0x305   :  { %970 = vst.msk [vmem:[%s1802_s14] sm:$0xff] %vm696_vm14, %v968_v53 }
 0x306   :  { %975 = vsyncpa [#allocation3], 1 }
 0x307   :  { %976 = vsyncpa [#allocation5], 1 }
 0x308   :  { %977 = vsyncpa [#allocation8], 1 }
 0x309   :  { %978 = vsyncpa [#allocation11], 1 }
 0x30a   :  { %979 = vsyncpa [#allocation14], 1 }
 0x30b   :  { %980 = vsyncpa [#allocation17], 1 }

// kernel: tpu_custom_call.1
= control target key start
LH: loop header
LB: loop body
LE: loop exit
PB: predicated region body
PF: predicated region fallthrough
CT: control target
= control target key end

     0   :  { %19 = vsyncpa [#allocation3], 0  ;;  %s1788_s0 = inlined_call_operand.hbm [shape: f32[8,13], index: 0, kind: input, shape index: {}]   ;;  %s1789_s1 = inlined_call_operand.hbm [shape: s32[8,12], index: 1, kind: input, shape index: {}]   ;;  %s1790_s2 = inlined_call_operand.hbm [shape: bf16[128,128], index: 2, kind: input, shape index: {}]   ;;  %s1791_s3 = inlined_call_operand.hbm [shape: bf16[128,128], index: 3, kind: input, shape index: {}]   ;;  %s1792_s4 = inlined_call_operand.hbm [shape: bf16[128,128], index: 4, kind: input, shape index: {}]   ;;  %s1793_s5 = inlined_call_operand.hbm [shape: bf16[128,128], index: 5, kind: input, shape index: {}]   ;;  %s1794_s6 = inlined_call_operand.vmem [shape: f32[1,128], index: 6, kind: input, shape index: {}]   ;;  %s1795_s7 = inlined_call_operand.hbm [shape: bf16[128,128], index: 7, kind: input, shape index: {}]   ;;  %s1796_s8 = inlined_call_operand.vmem [shape: f32[1,128], index: 8, kind: input, shape index: {}]   ;;  %s1797_s9 = inlined_call_operand.hbm [shape: bf16[128,128], index: 9, kind: input, shape index: {}]   ;;  %s1798_s10 = inlined_call_operand.hbm [shape: bf16[128,128], index: 10, kind: input, shape index: {}]   ;;  %s1799_s11 = inlined_call_operand.vmem [shape: f32[1,128], index: 11, kind: input, shape index: {}]   ;;  %s1800_s12 = inlined_call_operand.hbm [shape: bf16[128,128], index: 12, kind: input, shape index: {}]   ;;  %s1801_s13 = inlined_call_operand.vmem [shape: f32[1,128], index: 13, kind: input, shape index: {}]   ;;  %s1802_s14 = inlined_call_operand.vmem [shape: f32[8,1], index: 14, kind: output, shape index: {}]  }
   0x1   :  { %20 = vsyncpa [#allocation5], 0 }
   0x2   :  { %21 = vsyncpa [#allocation8], 0 }
   0x3   :  { %22 = vsyncpa [#allocation11], 0 }
   0x4   :  { %23 = vsyncpa [#allocation14], 0  ;;  %s41_s15 = sshll.u32 %s1789_s1, 4  ;;  %s42_s15 = int_to_ptr.hbm [resolvable:$true] %s41_s15 }
   0x5   :  { %24 = vsyncpa [#allocation17], 0  ;;  %s1605_s16 = smov [#allocation4]   ;;  %s64_s20 = sshll.u32 %s1791_s3, 4  ;;  %s65_s20 = int_to_ptr.hbm [resolvable:$true] %s64_s20 }
   0x6   :  { %s43_s17 = sshll.u32 %s1605_s16, 4  ;;  %s1606_s21 = smov [#allocation7]   ;;  %s44_s17 = int_to_ptr.vmem [resolvable:$true] %s43_s17 }
   0x7   :  { %46 = dma.hbm_to_vmem [thread:$0]  %s42_s15, 128, %s44_s17, [#allocation5]  }
   0x8   :  { %s66_s22 = sshll.u32 %s1606_s21, 4  ;;  %s90_s25 = sshll.u32 %s1793_s5, 4  ;;  %s67_s22 = int_to_ptr.vmem [resolvable:$true] %s66_s22  ;;  %s91_s25 = int_to_ptr.hbm [resolvable:$true] %s90_s25 }
   0x9   :  { %s1607_s1 = smov 64   ;;  %s1608_s26 = smov 4  }
   0xa   :  { %72 = dma.hbm_to_vmem [thread:$0]  %s65_s20, 1024, %s67_s22, [#allocation8], %s1607_s1, %s1607_s1, %s1608_s26  }
   0xb   :  { %s120_s29 = sshll.u32 %s1797_s9, 4  ;;  %s1609_s3 = smov [#allocation10]   ;;  %s121_s29 = int_to_ptr.hbm [resolvable:$true] %s120_s29 }
   0xc   :  { %s92_s30 = sshll.u32 %s1609_s3, 4  ;;  %s1610_s5 = smov [#allocation13]   ;;  %s93_s30 = int_to_ptr.vmem [resolvable:$true] %s92_s30 }
   0xd   :  { %98 = dma.hbm_to_vmem [thread:$0]  %s91_s25, 1024, %s93_s30, [#allocation11], %s1607_s1, %s1607_s1, %s1608_s26  }
   0xe   :  { %s122_s15 = sshll.u32 %s1610_s5, 4  ;;  %s30_s18 = sshll.u32 %s1788_s0, 4  ;;  %s123_s15 = int_to_ptr.vmem [resolvable:$true] %s122_s15  ;;  %s31_s18 = int_to_ptr.hbm [resolvable:$true] %s30_s18 }
   0xf   :  { %128 = dma.hbm_to_vmem [thread:$0]  %s121_s29, 1024, %s123_s15, [#allocation14], %s1607_s1, %s1607_s1, %s1608_s26  }
  0x10   :  { %s51_s20 = sshll.u32 %s1790_s2, 4  ;;  %s1611_s21 = smov [#allocation2]   ;;  %s52_s20 = int_to_ptr.hbm [resolvable:$true] %s51_s20 }
  0x11   :  { %s32_s22 = sshll.u32 %s1611_s21, 4  ;;  %s1612_s23 = smov [#allocation6]   ;;  %s33_s22 = int_to_ptr.vmem [resolvable:$true] %s32_s22 }
  0x12   :  { %35 = dma.hbm_to_vmem [thread:$0]  %s31_s18, 128, %s33_s22, [#allocation3]  }
  0x13   :  { %s53_s24 = sshll.u32 %s1612_s23, 4  ;;  %s77_s0 = sshll.u32 %s1792_s4, 4  ;;  %s54_s24 = int_to_ptr.vmem [resolvable:$true] %s53_s24  ;;  %s78_s0 = int_to_ptr.hbm [resolvable:$true] %s77_s0 }
  0x14   :  { %59 = dma.hbm_to_vmem [thread:$0]  %s52_s20, 1024, %s54_s24, [#allocation5], %s1607_s1, %s1607_s1, %s1608_s26  }
  0x15   :  { %s105_s2 = sshll.u32 %s1795_s7, 4  ;;  %s1613_s3 = smov [#allocation9]   ;;  %s106_s2 = int_to_ptr.hbm [resolvable:$true] %s105_s2 }
  0x16   :  { %s79_s30 = sshll.u32 %s1613_s3, 4  ;;  %s1614_s5 = smov [#allocation12]   ;;  %s80_s30 = int_to_ptr.vmem [resolvable:$true] %s79_s30 }
  0x17   :  { %85 = dma.hbm_to_vmem [thread:$0]  %s78_s0, 1024, %s80_s30, [#allocation8], %s1607_s1, %s1607_s1, %s1608_s26  }
  0x18   :  { %s107_s4 = sshll.u32 %s1614_s5, 4  ;;  %s133_s17 = sshll.u32 %s1798_s10, 4  ;;  %s108_s4 = int_to_ptr.vmem [resolvable:$true] %s107_s4  ;;  %s134_s17 = int_to_ptr.hbm [resolvable:$true] %s133_s17 }
  0x19   :  { %113 = dma.hbm_to_vmem [thread:$0]  %s106_s2, 1024, %s108_s4, [#allocation11], %s1607_s1, %s1607_s1, %s1608_s26  }
  0x1a   :  { %s148_s9 = sshll.u32 %s1800_s12, 4  ;;  %s1615_s19 = smov [#allocation15]   ;;  %s149_s9 = int_to_ptr.hbm [resolvable:$true] %s148_s9 }
  0x1b   :  { %s135_s20 = sshll.u32 %s1615_s19, 4  ;;  %s1616_s21 = smov [#allocation16]   ;;  %s136_s20 = int_to_ptr.vmem [resolvable:$true] %s135_s20 }
  0x1c   :  { %141 = dma.hbm_to_vmem [thread:$0]  %s134_s17, 1024, %s136_s20, [#allocation14], %s1607_s1, %s1607_s1, %s1608_s26  }
  0x1d   :  { %s150_s10 = sshll.u32 %s1616_s21, 4  ;;  %s151_s10 = int_to_ptr.vmem [resolvable:$true] %s150_s10 }
  0x1e   :  { %156 = dma.hbm_to_vmem [thread:$0]  %s149_s9, 1024, %s151_s10, [#allocation17], %s1607_s1, %s1607_s1, %s1608_s26  }
  0x1f   :  { %1593 = dma.done.wait [#allocation3], 128  }
  0x20   :  { %1594 = vsyncadd [#allocation3], 4294967168 }
  0x21   :  { %1595 = dma.done.wait [#allocation5], 1152  }
  0x22   :  { %1596 = vsyncadd [#allocation5], 4294966144 }
  0x23   :  { %1597 = dma.done.wait [#allocation8], 2048  }
  0x24   :  { %1598 = vsyncadd [#allocation8], 4294965248 }
  0x25   :  { %1599 = dma.done.wait [#allocation11], 2048  }
  0x26   :  { %1600 = vsyncadd [#allocation11], 4294965248 }
  0x27   :  { %1601 = dma.done.wait [#allocation14], 2048  }
  0x28   :  { %1602 = vsyncadd [#allocation14], 4294965248 }
  0x29   :  { %1603 = dma.done.wait [#allocation17], 1024  }
  0x2a   :  { %1604 = vsyncadd [#allocation17], 4294966272  ;;  %v1617_v0 = vmov 4   ;;  %v1618_v1 = vmov 0   ;;  %v1619_v2 = vmov 2   ;;  %v369_v3 = vld [vmem:[#allocation4] sm:$0xff]  ;;  %v386_v50 = vlaneseq }
  0x2b   :  { %1334 = vset.pattern.permute.xlu1 %v1617_v0  ;;  %1332 = vset.pattern.permute.xlu0 %v1618_v1  ;;  %v1251_v4 = vld [vmem:[#allocation10 + $0x38] sm:$0xff]  ;;  %v1250_v5 = vld [vmem:[#allocation10 + $0x30] sm:$0xff]  ;;  %v1249_v8 = vld [vmem:[#allocation10 + $0x28] sm:$0xff]  ;;  %v1620_v10 = vmov 5   ;;  %v1621_v11 = vmov 1   ;;  %v1622_v13 = vmov 6  }
  0x2c   :  { %1336 = vset.pattern.permute.xlu2 %v1619_v2  ;;  %491 = vperm.xlu1 %1334, %v369_v3   ;;  %v1275_v6 = vld [vmem:[#allocation7 + $0x38] sm:$0xff]  ;;  %v1274_v9 = vld [vmem:[#allocation7 + $0x30] sm:$0xff]  ;;  %v1248_v12 = vld [vmem:[#allocation10 + $0x20] sm:$0xff]  ;;  %v1623_v15 = vmov 3   ;;  %v1624_v17 = vmov 8   ;;  %v1625_v18 = vmov 7  }
  0x2d   :  { %389 = vperm.xlu0 %1332, %v369_v3   ;;  %271 = vmatpush.bf16.msra.mxu0 %v1251_v4  ;;  %v1267_v7 = vld [vmem:[#allocation6 + $0x38] sm:$0xff]  ;;  %v1246_v16 = vld [vmem:[#allocation10 + $0x10] sm:$0xff]  ;;  %v1245_v19 = vld [vmem:[#allocation10 + $0x8] sm:$0xff]  ;;  %v1626_v22 = vmov 9   ;;  %vm200_vm0 = vcmask 105472   ;;  %v1627_v23 = vmov 11  }
  0x2e   :  { %400 = vperm.xlu2 %1336, %v369_v3   ;;  %563 = vmatpush.bf16.msra.mxu3 %v1275_v6  ;;  %v1247_v14 = vld [vmem:[#allocation10 + $0x18] sm:$0xff]  ;;  %v1244_v20 = vld [vmem:[#allocation10] sm:$0xff]  ;;  %v199_v21 = vld [vmem:[#allocation2] sm:$0xff]  ;;  %v1628_v25 = vmov 10   ;;  %v387_v55 = vand.u32 127, %v386_v50  ;;  %vm696_vm14 = vcmask 7168  }
  0x2f   :  { %461 = vmatpush.bf16.msra.mxu2 %v1267_v7  ;;  %v1014_v24 = vpack.c.bf16 %v199_v21, %v199_v21  ;;  %vm1013_vm1 = vmpackc.low %vm200_vm0, %vm200_vm0  ;;  %v1273_v26 = vld [vmem:[#allocation7 + $0x28] sm:$0xff]  ;;  %v1266_v27 = vld [vmem:[#allocation6 + $0x30] sm:$0xff]  ;;  %vm698_vm15 = vcmask 15360   ;;  %vm700_vm0 = vcmask 23552  }
  0x30   :  { %v1272_v28 = vld [vmem:[#allocation7 + $0x20] sm:$0xff]  ;;  %v1265_v29 = vld [vmem:[#allocation6 + $0x28] sm:$0xff]  ;;  %v1271_v30 = vld [vmem:[#allocation7 + $0x18] sm:$0xff] }
  0x31   :  { %272 = vmatpush.bf16.msra.mxu0 %v1250_v5  ;;  %v1264_v31 = vld [vmem:[#allocation6 + $0x20] sm:$0xff]  ;;  %v1270_v32 = vld [vmem:[#allocation7 + $0x10] sm:$0xff]  ;;  %v1263_v33 = vld [vmem:[#allocation6 + $0x18] sm:$0xff] }
  0x32   :  { %564 = vmatpush.bf16.msra.mxu3 %v1274_v9  ;;  %v1283_v34 = vld [vmem:[#allocation9 + $0x38] sm:$0xff]  ;;  %v1269_v35 = vld [vmem:[#allocation7 + $0x8] sm:$0xff]  ;;  %v1262_v36 = vld [vmem:[#allocation6 + $0x10] sm:$0xff] }
  0x33   :  { %462 = vmatpush.bf16.msra.mxu2 %v1266_v27  ;;  %v1282_v37 = vld [vmem:[#allocation9 + $0x30] sm:$0xff]  ;;  %v1259_v38 = vld [vmem:[#allocation12 + $0x38] sm:$0xff]  ;;  %v1268_v39 = vld [vmem:[#allocation7] sm:$0xff] }
  0x34   :  { %1335 = vset.pattern.permute.xlu1 %v1620_v10  ;;  %v1261_v40 = vld [vmem:[#allocation6 + $0x8] sm:$0xff]  ;;  %354 = vmatpush.bf16.msra.mxu1 %v1259_v38  ;;  %v1258_v43 = vld [vmem:[#allocation12 + $0x30] sm:$0xff]  ;;  %v1260_v44 = vld [vmem:[#allocation6] sm:$0xff] }
  0x35   :  { %1333 = vset.pattern.permute.xlu0 %v1621_v11  ;;  %496 = vperm.xlu1 %1335, %v369_v3   ;;  %v1281_v42 = vld [vmem:[#allocation9 + $0x28] sm:$0xff]  ;;  %v1280_v45 = vld [vmem:[#allocation9 + $0x20] sm:$0xff]  ;;  %v1279_v47 = vld [vmem:[#allocation9 + $0x18] sm:$0xff] }
  0x36   :  { %273 = vmatpush.bf16.msra.mxu0 %v1249_v8  ;;  %394 = vperm.xlu0 %1333, %v369_v3   ;;  %v1257_v46 = vld [vmem:[#allocation12 + $0x28] sm:$0xff]  ;;  %v1256_v49 = vld [vmem:[#allocation12 + $0x20] sm:$0xff]  ;;  %v1278_v53 = vld [vmem:[#allocation9 + $0x10] sm:$0xff] }
  0x37   :  { %1337 = vset.pattern.permute.xlu2 %v1622_v13  ;;  %565 = vmatpush.bf16.msra.mxu3 %v1273_v26  ;;  %v1255_v54 = vld [vmem:[#allocation12 + $0x18] sm:$0xff]  ;;  %v1277_v56 = vld [vmem:[#allocation9 + $0x8] sm:$0xff]  ;;  %v1254_v57 = vld [vmem:[#allocation12 + $0x10] sm:$0xff] }
  0x38   :  { %502 = vperm.xlu2 %1337, %v369_v3   ;;  %463 = vmatpush.bf16.msra.mxu2 %v1265_v29  ;;  %v1276_v59 = vld [vmem:[#allocation9] sm:$0xff]  ;;  %v1253_v62 = vld [vmem:[#allocation12 + $0x8] sm:$0xff] }
  0x39   :  { %355 = vmatpush.bf16.msra.mxu1 %v1258_v43  ;;  %v1252_v8 = vld [vmem:[#allocation12] sm:$0xff]  ;;  %v1286_v43 = vld [vmem:[#allocation13 + $0x10] sm:$0xff] }
  0x3a   :  { %274 = vmatpush.bf16.msra.mxu0 %v1248_v12 }
  0x3b   :  { %566 = vmatpush.bf16.msra.mxu3 %v1272_v28 }
  0x3c   :  { %464 = vmatpush.bf16.msra.mxu2 %v1264_v31 }
  0x3d   :  { %1338 = vset.pattern.permute.xlu1 %v1623_v15  ;;  %356 = vmatpush.bf16.msra.mxu1 %v1257_v46  ;;  %v1291_v15 = vld [vmem:[#allocation13 + $0x38] sm:$0xff] }
  0x3e   :  { %275 = vmatpush.bf16.msra.mxu0 %v1247_v14  ;;  %406 = vperm.xlu1 %1338, %v369_v3  }
  0x3f   :  { %1340 = vset.pattern.permute.xlu0 %v1624_v17  ;;  %567 = vmatpush.bf16.msra.mxu3 %v1271_v30 }
  0x40   :  { %593 = vperm.xlu0 %1340, %v369_v3   ;;  %1339 = vset.pattern.permute.xlu2 %v1625_v18 }
  0x41   :  { %508 = vperm.xlu2 %1339, %v369_v3   ;;  %465 = vmatpush.bf16.msra.mxu2 %v1263_v33 }
  0x42   :  { %276 = vmatpush.bf16.msra.mxu0 %v1246_v16  ;;  %357 = vmatpush.bf16.msra.mxu1 %v1256_v49 }
  0x43   :  { %568 = vmatpush.bf16.msra.mxu3 %v1270_v32  ;;  %v1345_v32 = vld [vmem:[%s1794_s6] ss:$0 sm:$0xff] }
  0x45   :  { %466 = vmatpush.bf16.msra.mxu2 %v1262_v36 }
  0x46   :  { %277 = vmatpush.bf16.msra.mxu0 %v1245_v19  ;;  %1341 = vset.pattern.permute.xlu1 %v1626_v22 }
  0x47   :  { %598 = vperm.xlu1 %1341, %v369_v3   ;;  %569 = vmatpush.bf16.msra.mxu3 %v1269_v35 }
  0x48   :  { %1344 = vset.pattern.permute.xlu0 %v1627_v23  ;;  %358 = vmatpush.bf16.msra.mxu1 %v1255_v54 }
  0x49   :  { %1342 = vset.pattern.permute.xlu2 %v1628_v25  ;;  %467 = vmatpush.bf16.msra.mxu2 %v1261_v40  ;;  %v1290_v40 = vld [vmem:[#allocation13 + $0x30] sm:$0xff] }
  0x4a   :  { %278 = vmatpush.bf16.msra.mxu0 %v1244_v20  ;;  %604 = vperm.xlu2 %1342, %v369_v3  }
  0x4b   :  { %570 = vmatpush.bf16.msra.mxu3 %v1268_v39 }
  0x4c   :  { %359 = vmatpush.bf16.msra.mxu1 %v1254_v57 }
  0x4d   :  { %1015 = vmatmul.msk.bf16.vlgmr.msra.gmra.mxu0 %vm1013_vm1, %v1014_v24  ;;  %468 = vmatpush.bf16.msra.mxu2 %v1260_v44  ;;  %v1285_v44 = vld [vmem:[#allocation13 + $0x8] sm:$0xff]  ;;  %vm702_vm1 = vcmask 31744  }
  0x4e   :  { %665 = vmatpush.bf16.msrb.mxu0 %v1283_v34 }
  0x4f   :  { %1343 = vset.pattern.permute.xlu1 %v1627_v23 }
  0x50   :  { %610 = vperm.xlu1 %1343, %v369_v3   ;;  %360 = vmatpush.bf16.msra.mxu1 %v1253_v62 }
  0x51   :  { %850 = vmatpush.bf16.msrb.mxu2 %v1291_v15  ;;  %v1303_v15 = vld [vmem:[#allocation16 + $0x18] sm:$0xff] }
  0x52   :  { %666 = vmatpush.bf16.msrb.mxu0 %v1282_v37 }
  0x54   :  { %361 = vmatpush.bf16.msra.mxu1 %v1252_v8  ;;  %v1292_v8 = vld [vmem:[#allocation15] sm:$0xff] }
  0x55   :  { %851 = vmatpush.bf16.msrb.mxu2 %v1290_v40 }
  0x56   :  { %667 = vmatpush.bf16.msrb.mxu0 %v1281_v42  ;;  %v1288_v42 = vld [vmem:[#allocation13 + $0x20] sm:$0xff] }
  0x5a   :  { %668 = vmatpush.bf16.msrb.mxu0 %v1280_v45  ;;  %v1284_v45 = vld [vmem:[#allocation13] sm:$0xff] }
  0x5e   :  { %669 = vmatpush.bf16.msrb.mxu0 %v1279_v47 }
  0x62   :  { %670 = vmatpush.bf16.msrb.mxu0 %v1278_v53 }
  0x66   :  { %671 = vmatpush.bf16.msrb.mxu0 %v1277_v56 }
  0x6a   :  { %672 = vmatpush.bf16.msrb.mxu0 %v1276_v59 }
  0x88   :  { %v401_v41 = vpop.permute.xlu2 %400 }
  0x89   :  { %vm402_vm7 = vcmp.eq.s32.totalorder %v387_v55, %v401_v41  ;;  %v1289_v41 = vld [vmem:[#allocation13 + $0x28] sm:$0xff] }
  0x8a   :  { %v403_v9 = vsel %vm402_vm7, 1, %v1618_v1  ;;  %852 = vmatpush.bf16.msrb.mxu2 %v1289_v41 }
  0x8e   :  { %853 = vmatpush.bf16.msrb.mxu2 %v1288_v42 }
  0x92   :  { %v503_v48 = vpop.permute.xlu2 %502 }
  0x93   :  { %vm504_vm4 = vcmp.eq.s32.totalorder %v387_v55, %v503_v48 }
  0x94   :  { %v505_v2 = vsel %vm504_vm4, 1, %v1618_v1 }
  0x9b   :  { %v509_v58 = vpop.permute.xlu2 %508 }
  0x9c   :  { %vm510_vm6 = vcmp.eq.s32.totalorder %v387_v55, %v509_v58 }
  0x9d   :  { %v511_v6 = vsel %vm510_vm6, 1, %v1618_v1 }
  0x9e   :  { %v492_v51 = vpop.permute.xlu1 %491 }
  0x9f   :  { %v390_v52 = vpop.permute.xlu0 %389  ;;  %vm493_vm2 = vcmp.eq.s32.totalorder %v387_v55, %v492_v51 }
  0xa0   :  { %vm391_vm3 = vcmp.eq.s32.totalorder %v387_v55, %v390_v52  ;;  %v494_v60 = vsel %vm493_vm2, 1, %v1618_v1  ;;  %v1346_v52 = vld [vmem:[%s1796_s8] ss:$0 sm:$0xff]  ;;  %vm704_vm2 = vcmask 39936  }
  0xa1   :  { %v392_v63 = vsel %vm391_vm3, 1, %v1618_v1  ;;  %vm706_vm3 = vcmask 48128  }
  0xa2   :  { %vm1176_vm4 = vmpackc.low %vm706_vm3, %vm706_vm3 }
  0xa4   :  { %v605_v22 = vpop.permute.xlu2 %604 }
  0xa5   :  { %vm606_vm12 = vcmp.eq.s32.totalorder %v387_v55, %v605_v22 }
  0xa6   :  { %v607_v27 = vsel %vm606_vm12, 1, %v1618_v1 }
  0xa7   :  { %v497_v61 = vpop.permute.xlu1 %496 }
  0xa8   :  { %vm498_vm5 = vcmp.eq.s32.totalorder %v387_v55, %v497_v61  ;;  %v395_v0 = vpop.permute.xlu0 %394 }
  0xa9   :  { %v499_v3 = vsel %vm498_vm5, 1, %v1618_v1  ;;  %vm396_vm8 = vcmp.eq.s32.totalorder %v387_v55, %v395_v0  ;;  %v1299_v0 = vld [vmem:[#allocation15 + $0x38] sm:$0xff] }
  0xaa   :  { %v500_v4 = vadd.s32 %v499_v3, %v494_v60  ;;  %v397_v5 = vsel %vm396_vm8, 1, %v1618_v1  ;;  %789 = vmatpush.bf16.msrb.mxu1 %v1299_v0  ;;  %v1297_v3 = vld [vmem:[#allocation15 + $0x28] sm:$0xff] }
  0xab   :  { %v398_v7 = vadd.s32 %v397_v5, %v392_v63  ;;  %v1295_v5 = vld [vmem:[#allocation15 + $0x18] sm:$0xff] }
  0xac   :  { %v506_v10 = vadd.s32 %v505_v2, %v500_v4  ;;  %v1298_v2 = vld [vmem:[#allocation15 + $0x30] sm:$0xff]  ;;  %v1296_v4 = vld [vmem:[#allocation15 + $0x20] sm:$0xff] }
  0xad   :  { %v404_v12 = vadd.s32 %v403_v9, %v398_v7  ;;  %v1293_v7 = vld [vmem:[#allocation15 + $0x8] sm:$0xff]  ;;  %v1307_v9 = vld [vmem:[#allocation16 + $0x38] sm:$0xff] }
  0xae   :  { %v512_v11 = vadd.s32 %v511_v6, %v506_v10  ;;  %790 = vmatpush.bf16.msrb.mxu1 %v1298_v2  ;;  %v1294_v6 = vld [vmem:[#allocation15 + $0x10] sm:$0xff]  ;;  %938 = vmatpush.bf16.msrb.mxu3 %v1307_v9 }
  0xaf   :  { %v1306_v10 = vld [vmem:[#allocation16 + $0x30] sm:$0xff] }
  0xb0   :  { %v407_v13 = vpop.permute.xlu1 %406  ;;  %v513_v14 = vcvt.s32.f32 %v512_v11  ;;  %v1305_v11 = vld [vmem:[#allocation16 + $0x28] sm:$0xff] }
  0xb1   :  { %vm408_vm9 = vcmp.eq.s32.totalorder %v387_v55, %v407_v13  ;;  %v1304_v13 = vld [vmem:[#allocation16 + $0x20] sm:$0xff] }
  0xb2   :  { %v409_v16 = vsel %vm408_vm9, 1, %v1618_v1  ;;  %v514_v17 = vpack.c.bf16 %v513_v14, %v513_v14  ;;  %v594_v19 = vpop.permute.xlu0 %593  ;;  %791 = vmatpush.bf16.msrb.mxu1 %v1297_v3  ;;  %939 = vmatpush.bf16.msrb.mxu3 %v1306_v10 }
  0xb3   :  { %v410_v18 = vadd.s32 %v409_v16, %v404_v12  ;;  %vm595_vm10 = vcmp.eq.s32.totalorder %v387_v55, %v594_v19 }
  0xb4   :  { %571 = vmatmul.bf16.vlgmr.msra.gmra.mxu3 %v514_v17  ;;  %v596_v24 = vsel %vm595_vm10, 1, %v1618_v1  ;;  %v1302_v17 = vld [vmem:[#allocation16 + $0x10] sm:$0xff] }
  0xb5   :  { %v411_v20 = vcvt.s32.f32 %v410_v18 }
  0xb6   :  { %792 = vmatpush.bf16.msrb.mxu1 %v1296_v4  ;;  %940 = vmatpush.bf16.msrb.mxu3 %v1305_v11 }
  0xb7   :  { %v412_v21 = vpack.c.bf16 %v411_v20, %v411_v20 }
  0xb9   :  { %v599_v23 = vpop.permute.xlu1 %598  ;;  %469 = vmatmul.bf16.vlgmr.msra.gmra.mxu2 %v412_v21 }
  0xba   :  { %vm600_vm11 = vcmp.eq.s32.totalorder %v387_v55, %v599_v23  ;;  %793 = vmatpush.bf16.msrb.mxu1 %v1295_v5  ;;  %941 = vmatpush.bf16.msrb.mxu3 %v1304_v13 }
  0xbb   :  { %v601_v25 = vsel %vm600_vm11, 1, %v1618_v1 }
  0xbc   :  { %v602_v26 = vadd.s32 %v601_v25, %v596_v24 }
  0xbe   :  { %v608_v28 = vadd.s32 %v607_v27, %v602_v26  ;;  %794 = vmatpush.bf16.msrb.mxu1 %v1294_v6  ;;  %942 = vmatpush.bf16.msrb.mxu3 %v1303_v15 }
  0xc2   :  { %v611_v29 = vpop.permute.xlu1 %610  ;;  %795 = vmatpush.bf16.msrb.mxu1 %v1293_v7  ;;  %943 = vmatpush.bf16.msrb.mxu3 %v1302_v17 }
  0xc3   :  { %vm612_vm13 = vcmp.eq.s32.totalorder %v387_v55, %v611_v29  ;;  %v1301_v29 = vld [vmem:[#allocation16 + $0x8] sm:$0xff] }
  0xc4   :  { %v613_v30 = vsel %vm612_vm13, 1, %v1618_v1  ;;  %v1287_v1 = vld [vmem:[#allocation13 + $0x18] sm:$0xff] }
  0xc5   :  { %v614_v31 = vadd.s32 %v613_v30, %v608_v28  ;;  %854 = vmatpush.bf16.msrb.mxu2 %v1287_v1  ;;  %v1300_v30 = vld [vmem:[#allocation16] sm:$0xff] }
  0xc6   :  { %796 = vmatpush.bf16.msrb.mxu1 %v1292_v8  ;;  %944 = vmatpush.bf16.msrb.mxu3 %v1301_v29 }
  0xc7   :  { %v615_v33 = vcvt.s32.f32 %v614_v31  ;;  %v1347_v31 = vld [vmem:[%s1799_s11] ss:$0 sm:$0xff] }
  0xc9   :  { %v616_v34 = vpack.c.bf16 %v615_v33, %v615_v33  ;;  %855 = vmatpush.bf16.msrb.mxu2 %v1286_v43 }
  0xca   :  { %v280_v35 = vpop.f32.mrf.mxu0  ;;  %945 = vmatpush.bf16.msrb.mxu3 %v1300_v30 }
  0xcb   :  { %v281_v36 = vadd.f32 %v1345_v32, %v280_v35  ;;  %673 = vmatmul.bf16.vlgmr.msrb.gmra.mxu0 %v616_v34 }
  0xcd   :  { %v284_v37 = vmax.f32 %v281_v36, 0.0  ;;  %856 = vmatpush.bf16.msrb.mxu2 %v1285_v44 }
  0xcf   :  { %v285_v38 = vpack.c.bf16 %v284_v37, %v284_v37 }
  0xd1   :  { %362 = vmatmul.bf16.vlgmr.msra.gmra.mxu1 %v285_v38  ;;  %857 = vmatpush.bf16.msrb.mxu2 %v1284_v45  ;;  %v1348_v38 = vld [vmem:[%s1801_s13] ss:$0 sm:$0xff] }
  0xd2   :  { %v282_v39 = vpop.f32.mrf.mxu0 }
 0x137   :  { %v572_v46 = vpop.f32.mrf.mxu3 }
 0x13c   :  { %v470_v47 = vpop.f32.mrf.mxu2 }
 0x13d   :  { %v684_v48 = vmul.f32 %v572_v46, %v470_v47 }
 0x13f   :  { %v574_v49 = vpop.f32.mrf.mxu3  ;;  %685 = vadd.xlane.f32.xlu1 %v684_v48 }
 0x144   :  { %v472_v50 = vpop.f32.mrf.mxu2 }
 0x148   :  { %v674_v51 = vpop.f32.mrf.mxu0 }
 0x149   :  { %v693_v61 = vmul.f32 %v674_v51, %v572_v46  ;;  %v690_v63 = vmul.f32 %v674_v51, %v470_v47 }
 0x14e   :  { %v363_v53 = vpop.f32.mrf.mxu1 }
 0x14f   :  { %v364_v54 = vadd.f32 %v1346_v52, %v363_v53 }
 0x150   :  { %v676_v56 = vpop.f32.mrf.mxu0 }
 0x151   :  { %v367_v55 = vmax.f32 %v364_v54, 0.0 }
 0x153   :  { %v681_v57 = vmul.f32 %v572_v46, %v367_v55  ;;  %v678_v58 = vmul.f32 %v470_v47, %v367_v55  ;;  %v368_v59 = vpack.c.bf16 %v367_v55, %v367_v55  ;;  %v687_v62 = vmul.f32 %v674_v51, %v367_v55 }
 0x155   :  { %682 = vadd.xlane.f32.xlu0 %v681_v57  ;;  %679 = vadd.xlane.f32.xlu2 %v678_v58 }
 0x156   :  { %858 = vmatmul.bf16.vlgmr.msrb.gmra.mxu2 %v368_v59  ;;  %v365_v60 = vpop.f32.mrf.mxu1 }
 0x15d   :  { %694 = vadd.xlane.f32.xlu0 %v693_v61  ;;  %688 = vadd.xlane.f32.xlu2 %v687_v62 }
 0x165   :  { %691 = vadd.xlane.f32.xlu2 %v690_v63 }
 0x1b2   :  { %v686_v19 = vpop.xlane.xlu1 %685 }
 0x1c8   :  { %v680_v12 = vpop.xlane.xlu2 %679  ;;  %v683_v14 = vpop.xlane.xlu0 %682 }
 0x1c9   :  { %v697_v18 = vsel %vm696_vm14, %v680_v12, %v683_v14 }
 0x1ca   :  { %v699_v20 = vsel %vm698_vm15, %v697_v18, %v686_v19 }
 0x1d0   :  { %v689_v16 = vpop.xlane.xlu2 %688  ;;  %v695_v23 = vpop.xlane.xlu0 %694 }
 0x1d1   :  { %v701_v21 = vsel %vm700_vm0, %v699_v20, %v689_v16 }
 0x1d8   :  { %v692_v22 = vpop.xlane.xlu2 %691 }
 0x1d9   :  { %v703_v24 = vsel %vm702_vm1, %v701_v21, %v692_v22  ;;  %v859_v25 = vpop.f32.mrf.mxu2 }
 0x1da   :  { %v705_v26 = vsel %vm704_vm2, %v703_v24, %v695_v23 }
 0x1db   :  { %v1177_v27 = vpack.c.bf16 %v705_v26, %v705_v26 }
 0x1dd   :  { %1178 = vmatmul.msk.bf16.vlgmr.msrb.gmra.mxu1 %vm1176_vm4, %v1177_v27 }
 0x1e1   :  { %v861_v28 = vpop.f32.mrf.mxu2 }
 0x25a   :  { %v798_v32 = vpop.f32.mrf.mxu1 }
 0x25b   :  { %v860_v33 = vadd.f32 %v859_v25, %v798_v32 }
 0x25d   :  { %v867_v34 = vadd.f32 %v1347_v31, %v860_v33 }
 0x25f   :  { %v868_v35 = vmax.f32 %v867_v34, 0.0 }
 0x261   :  { %v869_v36 = vpack.c.bf16 %v868_v35, %v868_v35 }
 0x262   :  { %v800_v37 = vpop.f32.mrf.mxu1 }
 0x263   :  { %946 = vmatmul.bf16.vlgmr.msrb.gmra.mxu3 %v869_v36 }
 0x2e6   :  { %v947_v39 = vpop.f32.mrf.mxu3 }
 0x2e7   :  { %v948_v40 = vadd.f32 %v1348_v38, %v947_v39 }
 0x2e9   :  { %v1243_v41 = vmul.f32 -1.442695, %v948_v40 }
 0x2eb   :  { %1349 = vpow2.f32 %v1243_v41 }
 0x2ee   :  { %v949_v42 = vpop.f32.mrf.mxu3 }
 0x2f1   :  { %v1350_v1 = vpop.eup %1349 }
 0x2f2   :  { %v954_v43 = vadd.f32 1.0, %v1350_v1 }
 0x2f4   :  { %1351 = vrcp.f32 %v954_v43  ;;  %v966_v47 = vand.u32 2147483648, %v954_v43  ;;  %v964_v49 = vand.u32 2147483647, %v954_v43  ;;  %vm960_vm6 = vweird.f32 %v954_v43 }
 0x2f6   :  { %v967_v51 = vor.u32 1.1754944e-38, %v966_v47  ;;  %vm965_vm8 = vcmp.eq.f32.partialorder %v964_v49, 8.507059e+37 }
 0x2fa   :  { %v1352_v44 = vpop.eup %1351 }
 0x2fb   :  { %v956_v45 = vmul.f32 %v1352_v44, %v954_v43  ;;  %vm961_vm5 = vweird.f32 %v1352_v44 }
 0x2fc   :  { %vm962_vm7 = vmor %vm960_vm6, %vm961_vm5 }
 0x2fd   :  { %v957_v46 = vsub.f32 1.0, %v956_v45 }
 0x2ff   :  { %v958_v48 = vmul.f32 %v1352_v44, %v957_v46 }
 0x301   :  { %v959_v50 = vadd.f32 %v1352_v44, %v958_v48 }
 0x303   :  { %v963_v52 = vsel %vm962_vm7, %v1352_v44, %v959_v50 }
 0x304   :  { %v968_v53 = vsel %vm965_vm8, %v967_v51, %v963_v52 }
 0x305   :  { %970 = vst.msk [vmem:[%s1802_s14] sm:$0xff] %vm696_vm14, %v968_v53 }
 0x306   :  { %975 = vsyncpa [#allocation3], 1 }
 0x307   :  { %976 = vsyncpa [#allocation5], 1 }
 0x308   :  { %977 = vsyncpa [#allocation8], 1 }
 0x309   :  { %978 = vsyncpa [#allocation11], 1 }
 0x30a   :  { %979 = vsyncpa [#allocation14], 1 }
 0x30b   :  { %980 = vsyncpa [#allocation17], 1 }

</bundles_post_ra>
